<compile_context>
chip_gen: v6e
topology: v6e:2x2x1
jax: 0.10.0
libtpu: 0.0.40
codegen_flags: <defaults>
</compile_context>

<pallas_src>
import math
import functools

import jax
import jax.numpy as jnp
from jax.experimental import pallas as pl
from jax.experimental.pallas import tpu as pltpu


def _layer_norm(y, g, b, eps=1e-5):
    mu = jnp.mean(y, axis=-1, keepdims=True)
    var = jnp.mean(jnp.square(y - mu), axis=-1, keepdims=True)
    return (y - mu) * jax.lax.rsqrt(var + eps) * g + b


def _encoder_kernel(mm_dtype,
                    x_ref,
                    wq_ref, bq_ref, wk_ref, bk_ref, wv_ref, bv_ref,
                    wo_ref, bo_ref,
                    w1_ref, b1_ref, w2_ref, b2_ref,
                    g1_ref, be1_ref, g2_ref, be2_ref, g3_ref, be3_ref,
                    o_ref):
    nb, S, D = x_ref.shape                     # block of nb batch elements
    H, _, hd = wq_ref.shape
    M = nb * S

    x = x_ref[...].astype(jnp.float32)         # (nb, S, D)
    xf = x.reshape(M, D)                       # flattened slab for all big matmuls
    xm = xf.astype(mm_dtype)

    # Causal-mask predicate (no dense (-inf) tensor is ever added to the scores).
    row = jax.lax.broadcasted_iota(jnp.int32, (nb, S, S), 1)
    col = jax.lax.broadcasted_iota(jnp.int32, (nb, S, S), 2)
    causal = col <= row

    # ---- multi-head self-attention (causal) ----
    # NOTE: for long sequences (S >~ 1024) this should switch to a KV-block online-softmax
    # (flash-style) loop so the (nb, S, S) scores never fully materialize in VMEM.
    attn = jnp.zeros((M, D), jnp.float32)
    for h in range(H):                         # static unroll; heads indexed on a MAJOR dim
        # 1/sqrt(hd) is already folded into wq/bq by the wrapper.
        q = (jnp.dot(xm, wq_ref[h], preferred_element_type=jnp.float32)
             + bq_ref[h]).reshape(nb, S, hd)
        k = (jnp.dot(xm, wk_ref[h], preferred_element_type=jnp.float32)
             + bk_ref[h]).reshape(nb, S, hd)
        v = (jnp.dot(xm, wv_ref[h], preferred_element_type=jnp.float32)
             + bv_ref[h]).reshape(nb, S, hd)

        s = jnp.einsum('bqd,bkd->bqk', q.astype(mm_dtype), k.astype(mm_dtype),
                       preferred_element_type=jnp.float32)          # (nb, S, S)
        m = jnp.max(jnp.where(causal, s, -jnp.inf), axis=-1, keepdims=True)
        p = jnp.where(causal, jnp.exp(s - m), 0.0)
        a = p * pl.reciprocal(jnp.sum(p, axis=-1, keepdims=True), approx=True)

        ctx = jnp.einsum('bqk,bkd->bqd', a.astype(mm_dtype), v.astype(mm_dtype),
                         preferred_element_type=jnp.float32)        # (nb, S, hd)
        # Per-head chunk of the output projection; accumulates directly into one (M, D)
        # slab -> no per-head concatenate, no lane-sliced activation views.
        attn = attn + jnp.dot(ctx.reshape(M, hd).astype(mm_dtype), wo_ref[h],
                              preferred_element_type=jnp.float32)
    attn = attn + bo_ref[...]

    # ---- residual + norm1 ----
    x1 = _layer_norm(xf + attn, g1_ref[...], be1_ref[...])

    # ---- feed-forward (relu) + residual + norm2 ----
    hdn = jnp.maximum(
        jnp.dot(x1.astype(mm_dtype), w1_ref[...], preferred_element_type=jnp.float32)
        + b1_ref[...], 0.0)
    ff = jnp.dot(hdn.astype(mm_dtype), w2_ref[...], preferred_element_type=jnp.float32) \
        + b2_ref[...]
    x2 = _layer_norm(x1 + ff, g2_ref[...], be2_ref[...])

    # ---- outer LayerNorm (self.layer_norm) ----
    y = _layer_norm(x2, g3_ref[...], be3_ref[...])

    o_ref[...] = y.reshape(nb, S, D).astype(o_ref.dtype)


def _pick_batch_block(N, S, D, F):
    """Largest batch block (preferring a divisor of N) that keeps the per-step working set
    modest and gives the matmuls a decent M-dim."""
    bytes_per_batch = 4 * S * (4 * D + F + S)          # activations + (S,S) scores, f32
    cap_mem = max(1, (6 << 20) // max(bytes_per_batch, 1))
    cap_rows = max(1, 512 // max(S, 1))                # aim for ~512 rows in the M-dim
    nb = max(1, min(N, cap_mem, cap_rows))
    while nb > 1 and N % nb:
        nb -= 1
    return nb


def transformer_encoder_layer_with_mask(x_snd, params, nhead, *,
                                        mm_dtype=jnp.float32, batch_block=None):
    """x_snd: (S, N, D) float32 -> (S, N, D) float32 (matches the PyTorch module).

    mm_dtype: dtype of MXU matmul operands.  Pass jnp.bfloat16 on v6e/v7x for much higher
    MXU throughput and half the resident weight VMEM (softmax / LayerNorm stay in f32).
    """
    S, N, D = x_snd.shape
    F = params['w1'].shape[0]
    H = nhead
    hd = D // H
    scale = 1.0 / math.sqrt(hd)

    x = jnp.transpose(x_snd, (1, 0, 2))                  # (N, S, D)

    # ---- one-time weight prep in XLA: transpose, split per head, fold the 1/sqrt(hd) ----
    w_in = params['w_in']                                # (3D, D)
    b_in = params['b_in'].reshape(-1)                    # (3D,)

    def split_heads_in(w, b, s=1.0):                     # w: (D, D) -> (H, D, hd)
        w_t = (w * s).T.reshape(D, H, hd).transpose(1, 0, 2)
        b_h = (b * s).reshape(H, 1, hd)
        return w_t.astype(mm_dtype), b_h.astype(jnp.float32)

    wq, bq = split_heads_in(w_in[:D], b_in[:D], scale)
    wk, bk = split_heads_in(w_in[D:2 * D], b_in[D:2 * D])
    wv, bv = split_heads_in(w_in[2 * D:], b_in[2 * D:])
    wo = params['w_out'].T.reshape(H, hd, D).astype(mm_dtype)     # (H, hd, D)
    bo = params['b_out'].reshape(1, D).astype(jnp.float32)
    w1t = params['w1'].T.astype(mm_dtype)                # (D, F)
    b1 = params['b1'].reshape(1, F).astype(jnp.float32)
    w2t = params['w2'].T.astype(mm_dtype)                # (F, D)
    b2 = params['b2'].reshape(1, D).astype(jnp.float32)
    g1, be1 = params['g1'].reshape(1, D), params['be1'].reshape(1, D)
    g2, be2 = params['g2'].reshape(1, D), params['be2'].reshape(1, D)
    g3, be3 = params['g3'].reshape(1, D), params['be3'].reshape(1, D)

    nb = batch_block if batch_block is not None else _pick_batch_block(N, S, D, F)
    grid = (pl.cdiv(N, nb),)

    def const_spec(shape):
        zeros = (0,) * len(shape)
        return pl.BlockSpec(shape, lambda n, _z=zeros: _z)

    in_specs = [
        pl.BlockSpec((nb, S, D), lambda n: (n, 0, 0)),   # x block
        const_spec((H, D, hd)), const_spec((H, 1, hd)),  # Wq, bq (scale folded in)
        const_spec((H, D, hd)), const_spec((H, 1, hd)),  # Wk, bk
        const_spec((H, D, hd)), const_spec((H, 1, hd)),  # Wv, bv
        const_spec((H, hd, D)), const_spec((1, D)),      # Wout (head-split), bout
        const_spec((D, F)), const_spec((1, F)),          # linear1 (pre-transposed)
        const_spec((F, D)), const_spec((1, D)),          # linear2 (pre-transposed)
        const_spec((1, D)), const_spec((1, D)),          # norm1
        const_spec((1, D)), const_spec((1, D)),          # norm2
        const_spec((1, D)), const_spec((1, D)),          # outer layer_norm
    ]

    out = pl.pallas_call(
        functools.partial(_encoder_kernel, mm_dtype),
        out_shape=jax.ShapeDtypeStruct((N, S, D), x.dtype),
        grid_spec=pltpu.PrefetchScalarGridSpec(
            num_scalar_prefetch=0,
            grid=grid,
            in_specs=in_specs,
            out_specs=pl.BlockSpec((nb, S, D), lambda n: (n, 0, 0)),
        ),
        compiler_params=pltpu.CompilerParams(
            dimension_semantics=("parallel",)),          # batch blocks are independent
    )(x, wq, bq, wk, bk, wv, bv, wo, bo, w1t, b1, w2t, b2,
      g1, be1, g2, be2, g3, be3)

    return jnp.transpose(out, (1, 0, 2))                 # back to (S, N, D)


# ---------------- pure-JAX reference (for correctness check) ----------------
def _ref_single(x, p, nhead):                            # x: (S, D)
    S, D = x.shape
    hd = D // nhead
    qkv = x @ p['w_in'].T + p['b_in']
    q, k, v = qkv[:, :D], qkv[:, D:2 * D], qkv[:, 2 * D:]
    mask = jnp.where(jnp.arange(S)[None, :] > jnp.arange(S)[:, None], -jnp.inf, 0.0)
    ctx = []
    for h in range(nhead):
        sl = slice(h * hd, (h + 1) * hd)
        s = q[:, sl] @ k[:, sl].T / math.sqrt(hd) + mask
        ctx.append(jax.nn.softmax(s, axis=-1) @ v[:, sl])
    ctx = jnp.concatenate(ctx, axis=-1)
    attn_out = ctx @ p['w_out'].T + p['b_out']

    def ln(y, g, b):
        mu = y.mean(-1, keepdims=True)
        var = ((y - mu) ** 2).mean(-1, keepdims=True)
        return (y - mu) / jnp.sqrt(var + 1e-5) * g + b

    x1 = ln(x + attn_out, p['g1'], p['be1'])
    ff = jnp.maximum(x1 @ p['w1'].T + p['b1'], 0.0) @ p['w2'].T + p['b2']
    x2 = ln(x1 + ff, p['g2'], p['be2'])
    return ln(x2, p['g3'], p['be3'])


def reference(x_snd, p, nhead):
    return jax.vmap(lambda xb: _ref_single(xb, p, nhead), in_axes=1, out_axes=1)(x_snd)


if __name__ == "__main__":
    S, N, D, H, F = 8, 2, 32, 4, 64                      # seq, batch, d_model, nhead, ffn
    key = jax.random.PRNGKey(0)
    ks = jax.random.split(key, 9)
    params = {
        'w_in':  jax.random.normal(ks[0], (3 * D, D), jnp.float32) * 0.1,
        'b_in':  jax.random.normal(ks[1], (1, 3 * D), jnp.float32) * 0.1,
        'w_out': jax.random.normal(ks[2], (D, D), jnp.float32) * 0.1,
        'b_out': jax.random.normal(ks[3], (1, D), jnp.float32) * 0.1,
        'w1':    jax.random.normal(ks[4], (F, D), jnp.float32) * 0.1,
        'b1':    jax.random.normal(ks[5], (1, F), jnp.float32) * 0.1,
        'w2':    jax.random.normal(ks[6], (D, F), jnp.float32) * 0.1,
        'b2':    jax.random.normal(ks[7], (1, D), jnp.float32) * 0.1,
        'g1': jnp.ones((1, D), jnp.float32),  'be1': jnp.zeros((1, D), jnp.float32),
        'g2': jnp.ones((1, D), jnp.float32),  'be2': jnp.zeros((1, D), jnp.float32),
        'g3': jnp.ones((1, D), jnp.float32),  'be3': jnp.zeros((1, D), jnp.float32),
    }
    x = jax.random.normal(ks[8], (S, N, D), jnp.float32)

    y = transformer_encoder_layer_with_mask(x, params, H)   # f32 matmuls for the exactness check
    jax.block_until_ready(y)

    y_ref = reference(x, params, H)
    assert y.shape == (S, N, D)
    # Tolerance accounts for the EUP approx-reciprocal used in the softmax normalization.
    assert jnp.allclose(y, y_ref, atol=5e-3, rtol=5e-3), "mismatch vs JAX reference"
    print("KERNEL_OK")
</pallas_src>

<mosaic_0001>
module attributes {stable_mosaic.version = 11 : i64} {
  func.func @_encoder_kernel(%arg0: i32, %arg1: memref<2x8x32xf32, #tpu.memory_space<vmem>>, %arg2: memref<4x32x8xf32, #tpu.memory_space<vmem>>, %arg3: memref<4x1x8xf32, #tpu.memory_space<vmem>>, %arg4: memref<4x32x8xf32, #tpu.memory_space<vmem>>, %arg5: memref<4x1x8xf32, #tpu.memory_space<vmem>>, %arg6: memref<4x32x8xf32, #tpu.memory_space<vmem>>, %arg7: memref<4x1x8xf32, #tpu.memory_space<vmem>>, %arg8: memref<4x8x32xf32, #tpu.memory_space<vmem>>, %arg9: memref<1x32xf32, #tpu.memory_space<vmem>>, %arg10: memref<32x64xf32, #tpu.memory_space<vmem>>, %arg11: memref<1x64xf32, #tpu.memory_space<vmem>>, %arg12: memref<64x32xf32, #tpu.memory_space<vmem>>, %arg13: memref<1x32xf32, #tpu.memory_space<vmem>>, %arg14: memref<1x32xf32, #tpu.memory_space<vmem>>, %arg15: memref<1x32xf32, #tpu.memory_space<vmem>>, %arg16: memref<1x32xf32, #tpu.memory_space<vmem>>, %arg17: memref<1x32xf32, #tpu.memory_space<vmem>>, %arg18: memref<1x32xf32, #tpu.memory_space<vmem>>, %arg19: memref<1x32xf32, #tpu.memory_space<vmem>>, %arg20: memref<2x8x32xf32, #tpu.memory_space<vmem>>) attributes {dimension_semantics = [#tpu.dimension_semantics<parallel>], iteration_bounds = array<i64: 1>, scalar_prefetch = 0 : i64, scratch_operands = 0 : i64, tpu.core_type = #tpu.core_type<tc>, window_params = [{transform_indices = @transform_0, window_bounds = array<i64: 2, 8, 32>}, {pipeline_mode = #tpu.pipeline_mode<synchronous>, transform_indices = @transform_1, window_bounds = array<i64: 4, 32, 8>}, {pipeline_mode = #tpu.pipeline_mode<synchronous>, transform_indices = @transform_2, window_bounds = array<i64: 4, 1, 8>}, {pipeline_mode = #tpu.pipeline_mode<synchronous>, transform_indices = @transform_3, window_bounds = array<i64: 4, 32, 8>}, {pipeline_mode = #tpu.pipeline_mode<synchronous>, transform_indices = @transform_4, window_bounds = array<i64: 4, 1, 8>}, {pipeline_mode = #tpu.pipeline_mode<synchronous>, transform_indices = @transform_5, window_bounds = array<i64: 4, 32, 8>}, {pipeline_mode = #tpu.pipeline_mode<synchronous>, transform_indices = @transform_6, window_bounds = array<i64: 4, 1, 8>}, {pipeline_mode = #tpu.pipeline_mode<synchronous>, transform_indices = @transform_7, window_bounds = array<i64: 4, 8, 32>}, {pipeline_mode = #tpu.pipeline_mode<synchronous>, transform_indices = @transform_8, window_bounds = array<i64: 1, 32>}, {pipeline_mode = #tpu.pipeline_mode<synchronous>, transform_indices = @transform_9, window_bounds = array<i64: 32, 64>}, {pipeline_mode = #tpu.pipeline_mode<synchronous>, transform_indices = @transform_10, window_bounds = array<i64: 1, 64>}, {pipeline_mode = #tpu.pipeline_mode<synchronous>, transform_indices = @transform_11, window_bounds = array<i64: 64, 32>}, {pipeline_mode = #tpu.pipeline_mode<synchronous>, transform_indices = @transform_12, window_bounds = array<i64: 1, 32>}, {pipeline_mode = #tpu.pipeline_mode<synchronous>, transform_indices = @transform_13, window_bounds = array<i64: 1, 32>}, {pipeline_mode = #tpu.pipeline_mode<synchronous>, transform_indices = @transform_14, window_bounds = array<i64: 1, 32>}, {pipeline_mode = #tpu.pipeline_mode<synchronous>, transform_indices = @transform_15, window_bounds = array<i64: 1, 32>}, {pipeline_mode = #tpu.pipeline_mode<synchronous>, transform_indices = @transform_16, window_bounds = array<i64: 1, 32>}, {pipeline_mode = #tpu.pipeline_mode<synchronous>, transform_indices = @transform_17, window_bounds = array<i64: 1, 32>}, {pipeline_mode = #tpu.pipeline_mode<synchronous>, transform_indices = @transform_18, window_bounds = array<i64: 1, 32>}, {transform_indices = @transform_19, window_bounds = array<i64: 2, 8, 32>}]} {
    %c0 = arith.constant 0 : index
    %c0_0 = arith.constant 0 : index
    %c0_1 = arith.constant 0 : index
    %0 = vector.load %arg1[%c0, %c0_0, %c0_1] : memref<2x8x32xf32, #tpu.memory_space<vmem>>, vector<2x8x32xf32>
    %1 = vector.shape_cast %0 : vector<2x8x32xf32> to vector<16x32xf32>
    %2 = tpu.iota {dimensions = array<i32: 1>} : vector<2x8x8xi32>
    %3 = tpu.iota {dimensions = array<i32: 2>} : vector<2x8x8xi32>
    %4 = arith.cmpi sle, %3, %2 : vector<2x8x8xi32>
    %cst = arith.constant 0.000000e+00 : f32
    %5 = vector.broadcast %cst : f32 to vector<16x32xf32>
    %c0_2 = arith.constant 0 : index
    %c0_3 = arith.constant 0 : index
    %c0_4 = arith.constant 0 : index
    %6 = vector.load %arg2[%c0_2, %c0_3, %c0_4] : memref<4x32x8xf32, #tpu.memory_space<vmem>>, vector<1x32x8xf32>
    %7 = vector.shape_cast %6 : vector<1x32x8xf32> to vector<32x8xf32>
    %cst_5 = arith.constant dense<0.000000e+00> : vector<16x8xf32>
    %8 = tpu.matmul %1, %7, %cst_5 {dimension_numbers = #tpu.dot_dimension_numbers<[1], [0], [0], [1], [0, 0, 1, 1], [], []>} : vector<16x32xf32>, vector<32x8xf32>, vector<16x8xf32> -> vector<16x8xf32>
    %c0_6 = arith.constant 0 : index
    %c0_7 = arith.constant 0 : index
    %c0_8 = arith.constant 0 : index
    %9 = vector.load %arg3[%c0_6, %c0_7, %c0_8] : memref<4x1x8xf32, #tpu.memory_space<vmem>>, vector<1x1x8xf32>
    %10 = vector.shape_cast %9 : vector<1x1x8xf32> to vector<1x8xf32>
    %11 = vector.broadcast %10 : vector<1x8xf32> to vector<16x8xf32>
    %12 = arith.addf %8, %11 : vector<16x8xf32>
    %13 = vector.shape_cast %12 : vector<16x8xf32> to vector<2x8x8xf32>
    %c0_9 = arith.constant 0 : index
    %c0_10 = arith.constant 0 : index
    %c0_11 = arith.constant 0 : index
    %14 = vector.load %arg4[%c0_9, %c0_10, %c0_11] : memref<4x32x8xf32, #tpu.memory_space<vmem>>, vector<1x32x8xf32>
    %15 = vector.shape_cast %14 : vector<1x32x8xf32> to vector<32x8xf32>
    %cst_12 = arith.constant dense<0.000000e+00> : vector<16x8xf32>
    %16 = tpu.matmul %1, %15, %cst_12 {dimension_numbers = #tpu.dot_dimension_numbers<[1], [0], [0], [1], [0, 0, 1, 1], [], []>} : vector<16x32xf32>, vector<32x8xf32>, vector<16x8xf32> -> vector<16x8xf32>
    %c0_13 = arith.constant 0 : index
    %c0_14 = arith.constant 0 : index
    %c0_15 = arith.constant 0 : index
    %17 = vector.load %arg5[%c0_13, %c0_14, %c0_15] : memref<4x1x8xf32, #tpu.memory_space<vmem>>, vector<1x1x8xf32>
    %18 = vector.shape_cast %17 : vector<1x1x8xf32> to vector<1x8xf32>
    %19 = vector.broadcast %18 : vector<1x8xf32> to vector<16x8xf32>
    %20 = arith.addf %16, %19 : vector<16x8xf32>
    %21 = vector.shape_cast %20 : vector<16x8xf32> to vector<2x8x8xf32>
    %c0_16 = arith.constant 0 : index
    %c0_17 = arith.constant 0 : index
    %c0_18 = arith.constant 0 : index
    %22 = vector.load %arg6[%c0_16, %c0_17, %c0_18] : memref<4x32x8xf32, #tpu.memory_space<vmem>>, vector<1x32x8xf32>
    %23 = vector.shape_cast %22 : vector<1x32x8xf32> to vector<32x8xf32>
    %cst_19 = arith.constant dense<0.000000e+00> : vector<16x8xf32>
    %24 = tpu.matmul %1, %23, %cst_19 {dimension_numbers = #tpu.dot_dimension_numbers<[1], [0], [0], [1], [0, 0, 1, 1], [], []>} : vector<16x32xf32>, vector<32x8xf32>, vector<16x8xf32> -> vector<16x8xf32>
    %c0_20 = arith.constant 0 : index
    %c0_21 = arith.constant 0 : index
    %c0_22 = arith.constant 0 : index
    %25 = vector.load %arg7[%c0_20, %c0_21, %c0_22] : memref<4x1x8xf32, #tpu.memory_space<vmem>>, vector<1x1x8xf32>
    %26 = vector.shape_cast %25 : vector<1x1x8xf32> to vector<1x8xf32>
    %27 = vector.broadcast %26 : vector<1x8xf32> to vector<16x8xf32>
    %28 = arith.addf %24, %27 : vector<16x8xf32>
    %29 = vector.shape_cast %28 : vector<16x8xf32> to vector<2x8x8xf32>
    "tpu.trace_start"() <{level = 10 : i32, message = "bqd,bkd->bqk"}> : () -> ()
    %cst_23 = arith.constant dense<0.000000e+00> : vector<2x8x8xf32>
    %30 = tpu.matmul %13, %21, %cst_23 {dimension_numbers = #tpu.dot_dimension_numbers<[2], [2], [1], [1], [0, 0, 0, 1, 1, 1], [0], [0]>} : vector<2x8x8xf32>, vector<2x8x8xf32>, vector<2x8x8xf32> -> vector<2x8x8xf32>
    %cst_24 = arith.constant 0xFF800000 : f32
    "tpu.trace_stop"() : () -> ()
    %31 = vector.broadcast %cst_24 : f32 to vector<2x8x8xf32>
    %32 = arith.select %4, %30, %31 : vector<2x8x8xi1>, vector<2x8x8xf32>
    %cst_25 = arith.constant dense<0xFF800000> : vector<2x8xf32>
    %33 = vector.multi_reduction <maximumf>, %32, %cst_25 [2] : vector<2x8x8xf32> to vector<2x8xf32>
    %34 = vector.shape_cast %33 : vector<2x8xf32> to vector<2x8x1xf32>
    %35 = vector.broadcast %34 : vector<2x8x1xf32> to vector<2x8x8xf32>
    %36 = arith.subf %30, %35 : vector<2x8x8xf32>
    %37 = math.exp %36 : vector<2x8x8xf32>
    %cst_26 = arith.constant 0.000000e+00 : f32
    %38 = vector.broadcast %cst_26 : f32 to vector<2x8x8xf32>
    %39 = arith.select %4, %37, %38 : vector<2x8x8xi1>, vector<2x8x8xf32>
    %cst_27 = arith.constant dense<0.000000e+00> : vector<2x8xf32>
    %40 = vector.multi_reduction <add>, %39, %cst_27 [2] : vector<2x8x8xf32> to vector<2x8xf32>
    %41 = vector.shape_cast %40 : vector<2x8xf32> to vector<2x8x1xf32>
    %42 = tpu.reciprocal %41 {approx = true} : vector<2x8x1xf32> -> vector<2x8x1xf32>
    %43 = vector.broadcast %42 : vector<2x8x1xf32> to vector<2x8x8xf32>
    %44 = arith.mulf %39, %43 : vector<2x8x8xf32>
    "tpu.trace_start"() <{level = 10 : i32, message = "bqk,bkd->bqd"}> : () -> ()
    %cst_28 = arith.constant dense<0.000000e+00> : vector<2x8x8xf32>
    %45 = tpu.matmul %44, %29, %cst_28 {dimension_numbers = #tpu.dot_dimension_numbers<[2], [1], [1], [2], [0, 0, 0, 1, 1, 2], [0], [0]>} : vector<2x8x8xf32>, vector<2x8x8xf32>, vector<2x8x8xf32> -> vector<2x8x8xf32>
    "tpu.trace_stop"() : () -> ()
    %46 = vector.shape_cast %45 : vector<2x8x8xf32> to vector<16x8xf32>
    %c0_29 = arith.constant 0 : index
    %c0_30 = arith.constant 0 : index
    %c0_31 = arith.constant 0 : index
    %47 = vector.load %arg8[%c0_29, %c0_30, %c0_31] : memref<4x8x32xf32, #tpu.memory_space<vmem>>, vector<1x8x32xf32>
    %48 = vector.shape_cast %47 : vector<1x8x32xf32> to vector<8x32xf32>
    %cst_32 = arith.constant dense<0.000000e+00> : vector<16x32xf32>
    %49 = tpu.matmul %46, %48, %cst_32 {dimension_numbers = #tpu.dot_dimension_numbers<[1], [0], [0], [1], [0, 0, 1, 1], [], []>} : vector<16x8xf32>, vector<8x32xf32>, vector<16x32xf32> -> vector<16x32xf32>
    %50 = arith.addf %5, %49 : vector<16x32xf32>
    %c1 = arith.constant 1 : index
    %c0_33 = arith.constant 0 : index
    %c0_34 = arith.constant 0 : index
    %51 = vector.load %arg2[%c1, %c0_33, %c0_34] : memref<4x32x8xf32, #tpu.memory_space<vmem>>, vector<1x32x8xf32>
    %52 = vector.shape_cast %51 : vector<1x32x8xf32> to vector<32x8xf32>
    %cst_35 = arith.constant dense<0.000000e+00> : vector<16x8xf32>
    %53 = tpu.matmul %1, %52, %cst_35 {dimension_numbers = #tpu.dot_dimension_numbers<[1], [0], [0], [1], [0, 0, 1, 1], [], []>} : vector<16x32xf32>, vector<32x8xf32>, vector<16x8xf32> -> vector<16x8xf32>
    %c1_36 = arith.constant 1 : index
    %c0_37 = arith.constant 0 : index
    %c0_38 = arith.constant 0 : index
    %54 = vector.load %arg3[%c1_36, %c0_37, %c0_38] : memref<4x1x8xf32, #tpu.memory_space<vmem>>, vector<1x1x8xf32>
    %55 = vector.shape_cast %54 : vector<1x1x8xf32> to vector<1x8xf32>
    %56 = vector.broadcast %55 : vector<1x8xf32> to vector<16x8xf32>
    %57 = arith.addf %53, %56 : vector<16x8xf32>
    %58 = vector.shape_cast %57 : vector<16x8xf32> to vector<2x8x8xf32>
    %c1_39 = arith.constant 1 : index
    %c0_40 = arith.constant 0 : index
    %c0_41 = arith.constant 0 : index
    %59 = vector.load %arg4[%c1_39, %c0_40, %c0_41] : memref<4x32x8xf32, #tpu.memory_space<vmem>>, vector<1x32x8xf32>
    %60 = vector.shape_cast %59 : vector<1x32x8xf32> to vector<32x8xf32>
    %cst_42 = arith.constant dense<0.000000e+00> : vector<16x8xf32>
    %61 = tpu.matmul %1, %60, %cst_42 {dimension_numbers = #tpu.dot_dimension_numbers<[1], [0], [0], [1], [0, 0, 1, 1], [], []>} : vector<16x32xf32>, vector<32x8xf32>, vector<16x8xf32> -> vector<16x8xf32>
    %c1_43 = arith.constant 1 : index
    %c0_44 = arith.constant 0 : index
    %c0_45 = arith.constant 0 : index
    %62 = vector.load %arg5[%c1_43, %c0_44, %c0_45] : memref<4x1x8xf32, #tpu.memory_space<vmem>>, vector<1x1x8xf32>
    %63 = vector.shape_cast %62 : vector<1x1x8xf32> to vector<1x8xf32>
    %64 = vector.broadcast %63 : vector<1x8xf32> to vector<16x8xf32>
    %65 = arith.addf %61, %64 : vector<16x8xf32>
    %66 = vector.shape_cast %65 : vector<16x8xf32> to vector<2x8x8xf32>
    %c1_46 = arith.constant 1 : index
    %c0_47 = arith.constant 0 : index
    %c0_48 = arith.constant 0 : index
    %67 = vector.load %arg6[%c1_46, %c0_47, %c0_48] : memref<4x32x8xf32, #tpu.memory_space<vmem>>, vector<1x32x8xf32>
    %68 = vector.shape_cast %67 : vector<1x32x8xf32> to vector<32x8xf32>
    %cst_49 = arith.constant dense<0.000000e+00> : vector<16x8xf32>
    %69 = tpu.matmul %1, %68, %cst_49 {dimension_numbers = #tpu.dot_dimension_numbers<[1], [0], [0], [1], [0, 0, 1, 1], [], []>} : vector<16x32xf32>, vector<32x8xf32>, vector<16x8xf32> -> vector<16x8xf32>
    %c1_50 = arith.constant 1 : index
    %c0_51 = arith.constant 0 : index
    %c0_52 = arith.constant 0 : index
    %70 = vector.load %arg7[%c1_50, %c0_51, %c0_52] : memref<4x1x8xf32, #tpu.memory_space<vmem>>, vector<1x1x8xf32>
    %71 = vector.shape_cast %70 : vector<1x1x8xf32> to vector<1x8xf32>
    %72 = vector.broadcast %71 : vector<1x8xf32> to vector<16x8xf32>
    %73 = arith.addf %69, %72 : vector<16x8xf32>
    %74 = vector.shape_cast %73 : vector<16x8xf32> to vector<2x8x8xf32>
    "tpu.trace_start"() <{level = 10 : i32, message = "bqd,bkd->bqk"}> : () -> ()
    %cst_53 = arith.constant dense<0.000000e+00> : vector<2x8x8xf32>
    %75 = tpu.matmul %58, %66, %cst_53 {dimension_numbers = #tpu.dot_dimension_numbers<[2], [2], [1], [1], [0, 0, 0, 1, 1, 1], [0], [0]>} : vector<2x8x8xf32>, vector<2x8x8xf32>, vector<2x8x8xf32> -> vector<2x8x8xf32>
    %cst_54 = arith.constant 0xFF800000 : f32
    "tpu.trace_stop"() : () -> ()
    %76 = vector.broadcast %cst_54 : f32 to vector<2x8x8xf32>
    %77 = arith.select %4, %75, %76 : vector<2x8x8xi1>, vector<2x8x8xf32>
    %cst_55 = arith.constant dense<0xFF800000> : vector<2x8xf32>
    %78 = vector.multi_reduction <maximumf>, %77, %cst_55 [2] : vector<2x8x8xf32> to vector<2x8xf32>
    %79 = vector.shape_cast %78 : vector<2x8xf32> to vector<2x8x1xf32>
    %80 = vector.broadcast %79 : vector<2x8x1xf32> to vector<2x8x8xf32>
    %81 = arith.subf %75, %80 : vector<2x8x8xf32>
    %82 = math.exp %81 : vector<2x8x8xf32>
    %cst_56 = arith.constant 0.000000e+00 : f32
    %83 = vector.broadcast %cst_56 : f32 to vector<2x8x8xf32>
    %84 = arith.select %4, %82, %83 : vector<2x8x8xi1>, vector<2x8x8xf32>
    %cst_57 = arith.constant dense<0.000000e+00> : vector<2x8xf32>
    %85 = vector.multi_reduction <add>, %84, %cst_57 [2] : vector<2x8x8xf32> to vector<2x8xf32>
    %86 = vector.shape_cast %85 : vector<2x8xf32> to vector<2x8x1xf32>
    %87 = tpu.reciprocal %86 {approx = true} : vector<2x8x1xf32> -> vector<2x8x1xf32>
    %88 = vector.broadcast %87 : vector<2x8x1xf32> to vector<2x8x8xf32>
    %89 = arith.mulf %84, %88 : vector<2x8x8xf32>
    "tpu.trace_start"() <{level = 10 : i32, message = "bqk,bkd->bqd"}> : () -> ()
    %cst_58 = arith.constant dense<0.000000e+00> : vector<2x8x8xf32>
    %90 = tpu.matmul %89, %74, %cst_58 {dimension_numbers = #tpu.dot_dimension_numbers<[2], [1], [1], [2], [0, 0, 0, 1, 1, 2], [0], [0]>} : vector<2x8x8xf32>, vector<2x8x8xf32>, vector<2x8x8xf32> -> vector<2x8x8xf32>
    "tpu.trace_stop"() : () -> ()
    %91 = vector.shape_cast %90 : vector<2x8x8xf32> to vector<16x8xf32>
    %c1_59 = arith.constant 1 : index
    %c0_60 = arith.constant 0 : index
    %c0_61 = arith.constant 0 : index
    %92 = vector.load %arg8[%c1_59, %c0_60, %c0_61] : memref<4x8x32xf32, #tpu.memory_space<vmem>>, vector<1x8x32xf32>
    %93 = vector.shape_cast %92 : vector<1x8x32xf32> to vector<8x32xf32>
    %cst_62 = arith.constant dense<0.000000e+00> : vector<16x32xf32>
    %94 = tpu.matmul %91, %93, %cst_62 {dimension_numbers = #tpu.dot_dimension_numbers<[1], [0], [0], [1], [0, 0, 1, 1], [], []>} : vector<16x8xf32>, vector<8x32xf32>, vector<16x32xf32> -> vector<16x32xf32>
    %95 = arith.addf %50, %94 : vector<16x32xf32>
    %c2 = arith.constant 2 : index
    %c0_63 = arith.constant 0 : index
    %c0_64 = arith.constant 0 : index
    %96 = vector.load %arg2[%c2, %c0_63, %c0_64] : memref<4x32x8xf32, #tpu.memory_space<vmem>>, vector<1x32x8xf32>
    %97 = vector.shape_cast %96 : vector<1x32x8xf32> to vector<32x8xf32>
    %cst_65 = arith.constant dense<0.000000e+00> : vector<16x8xf32>
    %98 = tpu.matmul %1, %97, %cst_65 {dimension_numbers = #tpu.dot_dimension_numbers<[1], [0], [0], [1], [0, 0, 1, 1], [], []>} : vector<16x32xf32>, vector<32x8xf32>, vector<16x8xf32> -> vector<16x8xf32>
    %c2_66 = arith.constant 2 : index
    %c0_67 = arith.constant 0 : index
    %c0_68 = arith.constant 0 : index
    %99 = vector.load %arg3[%c2_66, %c0_67, %c0_68] : memref<4x1x8xf32, #tpu.memory_space<vmem>>, vector<1x1x8xf32>
    %100 = vector.shape_cast %99 : vector<1x1x8xf32> to vector<1x8xf32>
    %101 = vector.broadcast %100 : vector<1x8xf32> to vector<16x8xf32>
    %102 = arith.addf %98, %101 : vector<16x8xf32>
    %103 = vector.shape_cast %102 : vector<16x8xf32> to vector<2x8x8xf32>
    %c2_69 = arith.constant 2 : index
    %c0_70 = arith.constant 0 : index
    %c0_71 = arith.constant 0 : index
    %104 = vector.load %arg4[%c2_69, %c0_70, %c0_71] : memref<4x32x8xf32, #tpu.memory_space<vmem>>, vector<1x32x8xf32>
    %105 = vector.shape_cast %104 : vector<1x32x8xf32> to vector<32x8xf32>
    %cst_72 = arith.constant dense<0.000000e+00> : vector<16x8xf32>
    %106 = tpu.matmul %1, %105, %cst_72 {dimension_numbers = #tpu.dot_dimension_numbers<[1], [0], [0], [1], [0, 0, 1, 1], [], []>} : vector<16x32xf32>, vector<32x8xf32>, vector<16x8xf32> -> vector<16x8xf32>
    %c2_73 = arith.constant 2 : index
    %c0_74 = arith.constant 0 : index
    %c0_75 = arith.constant 0 : index
    %107 = vector.load %arg5[%c2_73, %c0_74, %c0_75] : memref<4x1x8xf32, #tpu.memory_space<vmem>>, vector<1x1x8xf32>
    %108 = vector.shape_cast %107 : vector<1x1x8xf32> to vector<1x8xf32>
    %109 = vector.broadcast %108 : vector<1x8xf32> to vector<16x8xf32>
    %110 = arith.addf %106, %109 : vector<16x8xf32>
    %111 = vector.shape_cast %110 : vector<16x8xf32> to vector<2x8x8xf32>
    %c2_76 = arith.constant 2 : index
    %c0_77 = arith.constant 0 : index
    %c0_78 = arith.constant 0 : index
    %112 = vector.load %arg6[%c2_76, %c0_77, %c0_78] : memref<4x32x8xf32, #tpu.memory_space<vmem>>, vector<1x32x8xf32>
    %113 = vector.shape_cast %112 : vector<1x32x8xf32> to vector<32x8xf32>
    %cst_79 = arith.constant dense<0.000000e+00> : vector<16x8xf32>
    %114 = tpu.matmul %1, %113, %cst_79 {dimension_numbers = #tpu.dot_dimension_numbers<[1], [0], [0], [1], [0, 0, 1, 1], [], []>} : vector<16x32xf32>, vector<32x8xf32>, vector<16x8xf32> -> vector<16x8xf32>
    %c2_80 = arith.constant 2 : index
    %c0_81 = arith.constant 0 : index
    %c0_82 = arith.constant 0 : index
    %115 = vector.load %arg7[%c2_80, %c0_81, %c0_82] : memref<4x1x8xf32, #tpu.memory_space<vmem>>, vector<1x1x8xf32>
    %116 = vector.shape_cast %115 : vector<1x1x8xf32> to vector<1x8xf32>
    %117 = vector.broadcast %116 : vector<1x8xf32> to vector<16x8xf32>
    %118 = arith.addf %114, %117 : vector<16x8xf32>
    %119 = vector.shape_cast %118 : vector<16x8xf32> to vector<2x8x8xf32>
    "tpu.trace_start"() <{level = 10 : i32, message = "bqd,bkd->bqk"}> : () -> ()
    %cst_83 = arith.constant dense<0.000000e+00> : vector<2x8x8xf32>
    %120 = tpu.matmul %103, %111, %cst_83 {dimension_numbers = #tpu.dot_dimension_numbers<[2], [2], [1], [1], [0, 0, 0, 1, 1, 1], [0], [0]>} : vector<2x8x8xf32>, vector<2x8x8xf32>, vector<2x8x8xf32> -> vector<2x8x8xf32>
    %cst_84 = arith.constant 0xFF800000 : f32
    "tpu.trace_stop"() : () -> ()
    %121 = vector.broadcast %cst_84 : f32 to vector<2x8x8xf32>
    %122 = arith.select %4, %120, %121 : vector<2x8x8xi1>, vector<2x8x8xf32>
    %cst_85 = arith.constant dense<0xFF800000> : vector<2x8xf32>
    %123 = vector.multi_reduction <maximumf>, %122, %cst_85 [2] : vector<2x8x8xf32> to vector<2x8xf32>
    %124 = vector.shape_cast %123 : vector<2x8xf32> to vector<2x8x1xf32>
    %125 = vector.broadcast %124 : vector<2x8x1xf32> to vector<2x8x8xf32>
    %126 = arith.subf %120, %125 : vector<2x8x8xf32>
    %127 = math.exp %126 : vector<2x8x8xf32>
    %cst_86 = arith.constant 0.000000e+00 : f32
    %128 = vector.broadcast %cst_86 : f32 to vector<2x8x8xf32>
    %129 = arith.select %4, %127, %128 : vector<2x8x8xi1>, vector<2x8x8xf32>
    %cst_87 = arith.constant dense<0.000000e+00> : vector<2x8xf32>
    %130 = vector.multi_reduction <add>, %129, %cst_87 [2] : vector<2x8x8xf32> to vector<2x8xf32>
    %131 = vector.shape_cast %130 : vector<2x8xf32> to vector<2x8x1xf32>
    %132 = tpu.reciprocal %131 {approx = true} : vector<2x8x1xf32> -> vector<2x8x1xf32>
    %133 = vector.broadcast %132 : vector<2x8x1xf32> to vector<2x8x8xf32>
    %134 = arith.mulf %129, %133 : vector<2x8x8xf32>
    "tpu.trace_start"() <{level = 10 : i32, message = "bqk,bkd->bqd"}> : () -> ()
    %cst_88 = arith.constant dense<0.000000e+00> : vector<2x8x8xf32>
    %135 = tpu.matmul %134, %119, %cst_88 {dimension_numbers = #tpu.dot_dimension_numbers<[2], [1], [1], [2], [0, 0, 0, 1, 1, 2], [0], [0]>} : vector<2x8x8xf32>, vector<2x8x8xf32>, vector<2x8x8xf32> -> vector<2x8x8xf32>
    "tpu.trace_stop"() : () -> ()
    %136 = vector.shape_cast %135 : vector<2x8x8xf32> to vector<16x8xf32>
    %c2_89 = arith.constant 2 : index
    %c0_90 = arith.constant 0 : index
    %c0_91 = arith.constant 0 : index
    %137 = vector.load %arg8[%c2_89, %c0_90, %c0_91] : memref<4x8x32xf32, #tpu.memory_space<vmem>>, vector<1x8x32xf32>
    %138 = vector.shape_cast %137 : vector<1x8x32xf32> to vector<8x32xf32>
    %cst_92 = arith.constant dense<0.000000e+00> : vector<16x32xf32>
    %139 = tpu.matmul %136, %138, %cst_92 {dimension_numbers = #tpu.dot_dimension_numbers<[1], [0], [0], [1], [0, 0, 1, 1], [], []>} : vector<16x8xf32>, vector<8x32xf32>, vector<16x32xf32> -> vector<16x32xf32>
    %140 = arith.addf %95, %139 : vector<16x32xf32>
    %c3 = arith.constant 3 : index
    %c0_93 = arith.constant 0 : index
    %c0_94 = arith.constant 0 : index
    %141 = vector.load %arg2[%c3, %c0_93, %c0_94] : memref<4x32x8xf32, #tpu.memory_space<vmem>>, vector<1x32x8xf32>
    %142 = vector.shape_cast %141 : vector<1x32x8xf32> to vector<32x8xf32>
    %cst_95 = arith.constant dense<0.000000e+00> : vector<16x8xf32>
    %143 = tpu.matmul %1, %142, %cst_95 {dimension_numbers = #tpu.dot_dimension_numbers<[1], [0], [0], [1], [0, 0, 1, 1], [], []>} : vector<16x32xf32>, vector<32x8xf32>, vector<16x8xf32> -> vector<16x8xf32>
    %c3_96 = arith.constant 3 : index
    %c0_97 = arith.constant 0 : index
    %c0_98 = arith.constant 0 : index
    %144 = vector.load %arg3[%c3_96, %c0_97, %c0_98] : memref<4x1x8xf32, #tpu.memory_space<vmem>>, vector<1x1x8xf32>
    %145 = vector.shape_cast %144 : vector<1x1x8xf32> to vector<1x8xf32>
    %146 = vector.broadcast %145 : vector<1x8xf32> to vector<16x8xf32>
    %147 = arith.addf %143, %146 : vector<16x8xf32>
    %148 = vector.shape_cast %147 : vector<16x8xf32> to vector<2x8x8xf32>
    %c3_99 = arith.constant 3 : index
    %c0_100 = arith.constant 0 : index
    %c0_101 = arith.constant 0 : index
    %149 = vector.load %arg4[%c3_99, %c0_100, %c0_101] : memref<4x32x8xf32, #tpu.memory_space<vmem>>, vector<1x32x8xf32>
    %150 = vector.shape_cast %149 : vector<1x32x8xf32> to vector<32x8xf32>
    %cst_102 = arith.constant dense<0.000000e+00> : vector<16x8xf32>
    %151 = tpu.matmul %1, %150, %cst_102 {dimension_numbers = #tpu.dot_dimension_numbers<[1], [0], [0], [1], [0, 0, 1, 1], [], []>} : vector<16x32xf32>, vector<32x8xf32>, vector<16x8xf32> -> vector<16x8xf32>
    %c3_103 = arith.constant 3 : index
    %c0_104 = arith.constant 0 : index
    %c0_105 = arith.constant 0 : index
    %152 = vector.load %arg5[%c3_103, %c0_104, %c0_105] : memref<4x1x8xf32, #tpu.memory_space<vmem>>, vector<1x1x8xf32>
    %153 = vector.shape_cast %152 : vector<1x1x8xf32> to vector<1x8xf32>
    %154 = vector.broadcast %153 : vector<1x8xf32> to vector<16x8xf32>
    %155 = arith.addf %151, %154 : vector<16x8xf32>
    %156 = vector.shape_cast %155 : vector<16x8xf32> to vector<2x8x8xf32>
    %c3_106 = arith.constant 3 : index
    %c0_107 = arith.constant 0 : index
    %c0_108 = arith.constant 0 : index
    %157 = vector.load %arg6[%c3_106, %c0_107, %c0_108] : memref<4x32x8xf32, #tpu.memory_space<vmem>>, vector<1x32x8xf32>
    %158 = vector.shape_cast %157 : vector<1x32x8xf32> to vector<32x8xf32>
    %cst_109 = arith.constant dense<0.000000e+00> : vector<16x8xf32>
    %159 = tpu.matmul %1, %158, %cst_109 {dimension_numbers = #tpu.dot_dimension_numbers<[1], [0], [0], [1], [0, 0, 1, 1], [], []>} : vector<16x32xf32>, vector<32x8xf32>, vector<16x8xf32> -> vector<16x8xf32>
    %c3_110 = arith.constant 3 : index
    %c0_111 = arith.constant 0 : index
    %c0_112 = arith.constant 0 : index
    %160 = vector.load %arg7[%c3_110, %c0_111, %c0_112] : memref<4x1x8xf32, #tpu.memory_space<vmem>>, vector<1x1x8xf32>
    %161 = vector.shape_cast %160 : vector<1x1x8xf32> to vector<1x8xf32>
    %162 = vector.broadcast %161 : vector<1x8xf32> to vector<16x8xf32>
    %163 = arith.addf %159, %162 : vector<16x8xf32>
    %164 = vector.shape_cast %163 : vector<16x8xf32> to vector<2x8x8xf32>
    "tpu.trace_start"() <{level = 10 : i32, message = "bqd,bkd->bqk"}> : () -> ()
    %cst_113 = arith.constant dense<0.000000e+00> : vector<2x8x8xf32>
    %165 = tpu.matmul %148, %156, %cst_113 {dimension_numbers = #tpu.dot_dimension_numbers<[2], [2], [1], [1], [0, 0, 0, 1, 1, 1], [0], [0]>} : vector<2x8x8xf32>, vector<2x8x8xf32>, vector<2x8x8xf32> -> vector<2x8x8xf32>
    %cst_114 = arith.constant 0xFF800000 : f32
    "tpu.trace_stop"() : () -> ()
    %166 = vector.broadcast %cst_114 : f32 to vector<2x8x8xf32>
    %167 = arith.select %4, %165, %166 : vector<2x8x8xi1>, vector<2x8x8xf32>
    %cst_115 = arith.constant dense<0xFF800000> : vector<2x8xf32>
    %168 = vector.multi_reduction <maximumf>, %167, %cst_115 [2] : vector<2x8x8xf32> to vector<2x8xf32>
    %169 = vector.shape_cast %168 : vector<2x8xf32> to vector<2x8x1xf32>
    %170 = vector.broadcast %169 : vector<2x8x1xf32> to vector<2x8x8xf32>
    %171 = arith.subf %165, %170 : vector<2x8x8xf32>
    %172 = math.exp %171 : vector<2x8x8xf32>
    %cst_116 = arith.constant 0.000000e+00 : f32
    %173 = vector.broadcast %cst_116 : f32 to vector<2x8x8xf32>
    %174 = arith.select %4, %172, %173 : vector<2x8x8xi1>, vector<2x8x8xf32>
    %cst_117 = arith.constant dense<0.000000e+00> : vector<2x8xf32>
    %175 = vector.multi_reduction <add>, %174, %cst_117 [2] : vector<2x8x8xf32> to vector<2x8xf32>
    %176 = vector.shape_cast %175 : vector<2x8xf32> to vector<2x8x1xf32>
    %177 = tpu.reciprocal %176 {approx = true} : vector<2x8x1xf32> -> vector<2x8x1xf32>
    %178 = vector.broadcast %177 : vector<2x8x1xf32> to vector<2x8x8xf32>
    %179 = arith.mulf %174, %178 : vector<2x8x8xf32>
    "tpu.trace_start"() <{level = 10 : i32, message = "bqk,bkd->bqd"}> : () -> ()
    %cst_118 = arith.constant dense<0.000000e+00> : vector<2x8x8xf32>
    %180 = tpu.matmul %179, %164, %cst_118 {dimension_numbers = #tpu.dot_dimension_numbers<[2], [1], [1], [2], [0, 0, 0, 1, 1, 2], [0], [0]>} : vector<2x8x8xf32>, vector<2x8x8xf32>, vector<2x8x8xf32> -> vector<2x8x8xf32>
    "tpu.trace_stop"() : () -> ()
    %181 = vector.shape_cast %180 : vector<2x8x8xf32> to vector<16x8xf32>
    %c3_119 = arith.constant 3 : index
    %c0_120 = arith.constant 0 : index
    %c0_121 = arith.constant 0 : index
    %182 = vector.load %arg8[%c3_119, %c0_120, %c0_121] : memref<4x8x32xf32, #tpu.memory_space<vmem>>, vector<1x8x32xf32>
    %183 = vector.shape_cast %182 : vector<1x8x32xf32> to vector<8x32xf32>
    %cst_122 = arith.constant dense<0.000000e+00> : vector<16x32xf32>
    %184 = tpu.matmul %181, %183, %cst_122 {dimension_numbers = #tpu.dot_dimension_numbers<[1], [0], [0], [1], [0, 0, 1, 1], [], []>} : vector<16x8xf32>, vector<8x32xf32>, vector<16x32xf32> -> vector<16x32xf32>
    %185 = arith.addf %140, %184 : vector<16x32xf32>
    %c0_123 = arith.constant 0 : index
    %c0_124 = arith.constant 0 : index
    %186 = vector.load %arg9[%c0_123, %c0_124] : memref<1x32xf32, #tpu.memory_space<vmem>>, vector<1x32xf32>
    %187 = vector.broadcast %186 : vector<1x32xf32> to vector<16x32xf32>
    %188 = arith.addf %185, %187 : vector<16x32xf32>
    %189 = arith.addf %1, %188 : vector<16x32xf32>
    %c0_125 = arith.constant 0 : index
    %c0_126 = arith.constant 0 : index
    %190 = vector.load %arg14[%c0_125, %c0_126] : memref<1x32xf32, #tpu.memory_space<vmem>>, vector<1x32xf32>
    %c0_127 = arith.constant 0 : index
    %c0_128 = arith.constant 0 : index
    %191 = vector.load %arg15[%c0_127, %c0_128] : memref<1x32xf32, #tpu.memory_space<vmem>>, vector<1x32xf32>
    %cst_129 = arith.constant dense<0.000000e+00> : vector<16xf32>
    %192 = vector.multi_reduction <add>, %189, %cst_129 [1] : vector<16x32xf32> to vector<16xf32>
    %193 = vector.shape_cast %192 : vector<16xf32> to vector<16x1xf32>
    %cst_130 = arith.constant 3.200000e+01 : f32
    %194 = vector.broadcast %cst_130 : f32 to vector<16x1xf32>
    %195 = arith.divf %193, %194 : vector<16x1xf32>
    %196 = vector.broadcast %195 : vector<16x1xf32> to vector<16x32xf32>
    %197 = arith.subf %189, %196 : vector<16x32xf32>
    %198 = arith.mulf %197, %197 : vector<16x32xf32>
    %cst_131 = arith.constant dense<0.000000e+00> : vector<16xf32>
    %199 = vector.multi_reduction <add>, %198, %cst_131 [1] : vector<16x32xf32> to vector<16xf32>
    %200 = vector.shape_cast %199 : vector<16xf32> to vector<16x1xf32>
    %cst_132 = arith.constant 3.200000e+01 : f32
    %201 = vector.broadcast %cst_132 : f32 to vector<16x1xf32>
    %202 = arith.divf %200, %201 : vector<16x1xf32>
    %203 = vector.broadcast %195 : vector<16x1xf32> to vector<16x32xf32>
    %204 = arith.subf %189, %203 : vector<16x32xf32>
    %cst_133 = arith.constant 9.99999974E-6 : f32
    %205 = vector.broadcast %cst_133 : f32 to vector<16x1xf32>
    %206 = arith.addf %202, %205 : vector<16x1xf32>
    %207 = math.rsqrt %206 : vector<16x1xf32>
    %208 = vector.broadcast %207 : vector<16x1xf32> to vector<16x32xf32>
    %209 = arith.mulf %204, %208 : vector<16x32xf32>
    %210 = vector.broadcast %190 : vector<1x32xf32> to vector<16x32xf32>
    %211 = arith.mulf %209, %210 : vector<16x32xf32>
    %212 = vector.broadcast %191 : vector<1x32xf32> to vector<16x32xf32>
    %213 = arith.addf %211, %212 : vector<16x32xf32>
    %c0_134 = arith.constant 0 : index
    %c0_135 = arith.constant 0 : index
    %214 = vector.load %arg10[%c0_134, %c0_135] : memref<32x64xf32, #tpu.memory_space<vmem>>, vector<32x64xf32>
    %cst_136 = arith.constant dense<0.000000e+00> : vector<16x64xf32>
    %215 = tpu.matmul %213, %214, %cst_136 {dimension_numbers = #tpu.dot_dimension_numbers<[1], [0], [0], [1], [0, 0, 1, 1], [], []>} : vector<16x32xf32>, vector<32x64xf32>, vector<16x64xf32> -> vector<16x64xf32>
    %c0_137 = arith.constant 0 : index
    %c0_138 = arith.constant 0 : index
    %216 = vector.load %arg11[%c0_137, %c0_138] : memref<1x64xf32, #tpu.memory_space<vmem>>, vector<1x64xf32>
    %217 = vector.broadcast %216 : vector<1x64xf32> to vector<16x64xf32>
    %218 = arith.addf %215, %217 : vector<16x64xf32>
    %cst_139 = arith.constant 0.000000e+00 : f32
    %219 = vector.broadcast %cst_139 : f32 to vector<16x64xf32>
    %220 = arith.maximumf %218, %219 : vector<16x64xf32>
    %c0_140 = arith.constant 0 : index
    %c0_141 = arith.constant 0 : index
    %221 = vector.load %arg12[%c0_140, %c0_141] : memref<64x32xf32, #tpu.memory_space<vmem>>, vector<64x32xf32>
    %cst_142 = arith.constant dense<0.000000e+00> : vector<16x32xf32>
    %222 = tpu.matmul %220, %221, %cst_142 {dimension_numbers = #tpu.dot_dimension_numbers<[1], [0], [0], [1], [0, 0, 1, 1], [], []>} : vector<16x64xf32>, vector<64x32xf32>, vector<16x32xf32> -> vector<16x32xf32>
    %c0_143 = arith.constant 0 : index
    %c0_144 = arith.constant 0 : index
    %223 = vector.load %arg13[%c0_143, %c0_144] : memref<1x32xf32, #tpu.memory_space<vmem>>, vector<1x32xf32>
    %224 = vector.broadcast %223 : vector<1x32xf32> to vector<16x32xf32>
    %225 = arith.addf %222, %224 : vector<16x32xf32>
    %226 = arith.addf %213, %225 : vector<16x32xf32>
    %c0_145 = arith.constant 0 : index
    %c0_146 = arith.constant 0 : index
    %227 = vector.load %arg16[%c0_145, %c0_146] : memref<1x32xf32, #tpu.memory_space<vmem>>, vector<1x32xf32>
    %c0_147 = arith.constant 0 : index
    %c0_148 = arith.constant 0 : index
    %228 = vector.load %arg17[%c0_147, %c0_148] : memref<1x32xf32, #tpu.memory_space<vmem>>, vector<1x32xf32>
    %cst_149 = arith.constant dense<0.000000e+00> : vector<16xf32>
    %229 = vector.multi_reduction <add>, %226, %cst_149 [1] : vector<16x32xf32> to vector<16xf32>
    %230 = vector.shape_cast %229 : vector<16xf32> to vector<16x1xf32>
    %cst_150 = arith.constant 3.200000e+01 : f32
    %231 = vector.broadcast %cst_150 : f32 to vector<16x1xf32>
    %232 = arith.divf %230, %231 : vector<16x1xf32>
    %233 = vector.broadcast %232 : vector<16x1xf32> to vector<16x32xf32>
    %234 = arith.subf %226, %233 : vector<16x32xf32>
    %235 = arith.mulf %234, %234 : vector<16x32xf32>
    %cst_151 = arith.constant dense<0.000000e+00> : vector<16xf32>
    %236 = vector.multi_reduction <add>, %235, %cst_151 [1] : vector<16x32xf32> to vector<16xf32>
    %237 = vector.shape_cast %236 : vector<16xf32> to vector<16x1xf32>
    %cst_152 = arith.constant 3.200000e+01 : f32
    %238 = vector.broadcast %cst_152 : f32 to vector<16x1xf32>
    %239 = arith.divf %237, %238 : vector<16x1xf32>
    %240 = vector.broadcast %232 : vector<16x1xf32> to vector<16x32xf32>
    %241 = arith.subf %226, %240 : vector<16x32xf32>
    %cst_153 = arith.constant 9.99999974E-6 : f32
    %242 = vector.broadcast %cst_153 : f32 to vector<16x1xf32>
    %243 = arith.addf %239, %242 : vector<16x1xf32>
    %244 = math.rsqrt %243 : vector<16x1xf32>
    %245 = vector.broadcast %244 : vector<16x1xf32> to vector<16x32xf32>
    %246 = arith.mulf %241, %245 : vector<16x32xf32>
    %247 = vector.broadcast %227 : vector<1x32xf32> to vector<16x32xf32>
    %248 = arith.mulf %246, %247 : vector<16x32xf32>
    %249 = vector.broadcast %228 : vector<1x32xf32> to vector<16x32xf32>
    %250 = arith.addf %248, %249 : vector<16x32xf32>
    %c0_154 = arith.constant 0 : index
    %c0_155 = arith.constant 0 : index
    %251 = vector.load %arg18[%c0_154, %c0_155] : memref<1x32xf32, #tpu.memory_space<vmem>>, vector<1x32xf32>
    %c0_156 = arith.constant 0 : index
    %c0_157 = arith.constant 0 : index
    %252 = vector.load %arg19[%c0_156, %c0_157] : memref<1x32xf32, #tpu.memory_space<vmem>>, vector<1x32xf32>
    %cst_158 = arith.constant dense<0.000000e+00> : vector<16xf32>
    %253 = vector.multi_reduction <add>, %250, %cst_158 [1] : vector<16x32xf32> to vector<16xf32>
    %254 = vector.shape_cast %253 : vector<16xf32> to vector<16x1xf32>
    %cst_159 = arith.constant 3.200000e+01 : f32
    %255 = vector.broadcast %cst_159 : f32 to vector<16x1xf32>
    %256 = arith.divf %254, %255 : vector<16x1xf32>
    %257 = vector.broadcast %256 : vector<16x1xf32> to vector<16x32xf32>
    %258 = arith.subf %250, %257 : vector<16x32xf32>
    %259 = arith.mulf %258, %258 : vector<16x32xf32>
    %cst_160 = arith.constant dense<0.000000e+00> : vector<16xf32>
    %260 = vector.multi_reduction <add>, %259, %cst_160 [1] : vector<16x32xf32> to vector<16xf32>
    %261 = vector.shape_cast %260 : vector<16xf32> to vector<16x1xf32>
    %cst_161 = arith.constant 3.200000e+01 : f32
    %262 = vector.broadcast %cst_161 : f32 to vector<16x1xf32>
    %263 = arith.divf %261, %262 : vector<16x1xf32>
    %264 = vector.broadcast %256 : vector<16x1xf32> to vector<16x32xf32>
    %265 = arith.subf %250, %264 : vector<16x32xf32>
    %cst_162 = arith.constant 9.99999974E-6 : f32
    %266 = vector.broadcast %cst_162 : f32 to vector<16x1xf32>
    %267 = arith.addf %263, %266 : vector<16x1xf32>
    %268 = math.rsqrt %267 : vector<16x1xf32>
    %269 = vector.broadcast %268 : vector<16x1xf32> to vector<16x32xf32>
    %270 = arith.mulf %265, %269 : vector<16x32xf32>
    %271 = vector.broadcast %251 : vector<1x32xf32> to vector<16x32xf32>
    %272 = arith.mulf %270, %271 : vector<16x32xf32>
    %273 = vector.broadcast %252 : vector<1x32xf32> to vector<16x32xf32>
    %274 = arith.addf %272, %273 : vector<16x32xf32>
    %275 = vector.shape_cast %274 : vector<16x32xf32> to vector<2x8x32xf32>
    %c0_163 = arith.constant 0 : index
    %c0_164 = arith.constant 0 : index
    %c0_165 = arith.constant 0 : index
    %276 = vector.load %arg20[%c0_163, %c0_164, %c0_165] : memref<2x8x32xf32, #tpu.memory_space<vmem>>, vector<2x8x32xf32>
    tpu.vector_store %arg20[%c0_163, %c0_164, %c0_165], %275 {strides = array<i32>} : memref<2x8x32xf32, #tpu.memory_space<vmem>>, vector<2x8x32xf32>,
    return
  }
  func.func @transform_0(%arg0: i32) -> (i32, i32, i32) {
    %c0_i32 = arith.constant 0 : i32
    %c0_i32_0 = arith.constant 0 : i32
    %c0_i32_1 = arith.constant 0 : i32
    return %arg0, %c0_i32, %c0_i32_0 : i32, i32, i32
  }
  func.func @transform_1(%arg0: i32) -> (i32, i32, i32) {
    %c0_i32 = arith.constant 0 : i32
    %c0_i32_0 = arith.constant 0 : i32
    %c0_i32_1 = arith.constant 0 : i32
    %c0_i32_2 = arith.constant 0 : i32
    return %c0_i32, %c0_i32_0, %c0_i32_1 : i32, i32, i32
  }
  func.func @transform_2(%arg0: i32) -> (i32, i32, i32) {
    %c0_i32 = arith.constant 0 : i32
    %c0_i32_0 = arith.constant 0 : i32
    %c0_i32_1 = arith.constant 0 : i32
    %c0_i32_2 = arith.constant 0 : i32
    return %c0_i32, %c0_i32_0, %c0_i32_1 : i32, i32, i32
  }
  func.func @transform_3(%arg0: i32) -> (i32, i32, i32) {
    %c0_i32 = arith.constant 0 : i32
    %c0_i32_0 = arith.constant 0 : i32
    %c0_i32_1 = arith.constant 0 : i32
    %c0_i32_2 = arith.constant 0 : i32
    return %c0_i32, %c0_i32_0, %c0_i32_1 : i32, i32, i32
  }
  func.func @transform_4(%arg0: i32) -> (i32, i32, i32) {
    %c0_i32 = arith.constant 0 : i32
    %c0_i32_0 = arith.constant 0 : i32
    %c0_i32_1 = arith.constant 0 : i32
    %c0_i32_2 = arith.constant 0 : i32
    return %c0_i32, %c0_i32_0, %c0_i32_1 : i32, i32, i32
  }
  func.func @transform_5(%arg0: i32) -> (i32, i32, i32) {
    %c0_i32 = arith.constant 0 : i32
    %c0_i32_0 = arith.constant 0 : i32
    %c0_i32_1 = arith.constant 0 : i32
    %c0_i32_2 = arith.constant 0 : i32
    return %c0_i32, %c0_i32_0, %c0_i32_1 : i32, i32, i32
  }
  func.func @transform_6(%arg0: i32) -> (i32, i32, i32) {
    %c0_i32 = arith.constant 0 : i32
    %c0_i32_0 = arith.constant 0 : i32
    %c0_i32_1 = arith.constant 0 : i32
    %c0_i32_2 = arith.constant 0 : i32
    return %c0_i32, %c0_i32_0, %c0_i32_1 : i32, i32, i32
  }
  func.func @transform_7(%arg0: i32) -> (i32, i32, i32) {
    %c0_i32 = arith.constant 0 : i32
    %c0_i32_0 = arith.constant 0 : i32
    %c0_i32_1 = arith.constant 0 : i32
    %c0_i32_2 = arith.constant 0 : i32
    return %c0_i32, %c0_i32_0, %c0_i32_1 : i32, i32, i32
  }
  func.func @transform_8(%arg0: i32) -> (i32, i32) {
    %c0_i32 = arith.constant 0 : i32
    %c0_i32_0 = arith.constant 0 : i32
    %c0_i32_1 = arith.constant 0 : i32
    return %c0_i32, %c0_i32_0 : i32, i32
  }
  func.func @transform_9(%arg0: i32) -> (i32, i32) {
    %c0_i32 = arith.constant 0 : i32
    %c0_i32_0 = arith.constant 0 : i32
    %c0_i32_1 = arith.constant 0 : i32
    return %c0_i32, %c0_i32_0 : i32, i32
  }
  func.func @transform_10(%arg0: i32) -> (i32, i32) {
    %c0_i32 = arith.constant 0 : i32
    %c0_i32_0 = arith.constant 0 : i32
    %c0_i32_1 = arith.constant 0 : i32
    return %c0_i32, %c0_i32_0 : i32, i32
  }
  func.func @transform_11(%arg0: i32) -> (i32, i32) {
    %c0_i32 = arith.constant 0 : i32
    %c0_i32_0 = arith.constant 0 : i32
    %c0_i32_1 = arith.constant 0 : i32
    return %c0_i32, %c0_i32_0 : i32, i32
  }
  func.func @transform_12(%arg0: i32) -> (i32, i32) {
    %c0_i32 = arith.constant 0 : i32
    %c0_i32_0 = arith.constant 0 : i32
    %c0_i32_1 = arith.constant 0 : i32
    return %c0_i32, %c0_i32_0 : i32, i32
  }
  func.func @transform_13(%arg0: i32) -> (i32, i32) {
    %c0_i32 = arith.constant 0 : i32
    %c0_i32_0 = arith.constant 0 : i32
    %c0_i32_1 = arith.constant 0 : i32
    return %c0_i32, %c0_i32_0 : i32, i32
  }
  func.func @transform_14(%arg0: i32) -> (i32, i32) {
    %c0_i32 = arith.constant 0 : i32
    %c0_i32_0 = arith.constant 0 : i32
    %c0_i32_1 = arith.constant 0 : i32
    return %c0_i32, %c0_i32_0 : i32, i32
  }
  func.func @transform_15(%arg0: i32) -> (i32, i32) {
    %c0_i32 = arith.constant 0 : i32
    %c0_i32_0 = arith.constant 0 : i32
    %c0_i32_1 = arith.constant 0 : i32
    return %c0_i32, %c0_i32_0 : i32, i32
  }
  func.func @transform_16(%arg0: i32) -> (i32, i32) {
    %c0_i32 = arith.constant 0 : i32
    %c0_i32_0 = arith.constant 0 : i32
    %c0_i32_1 = arith.constant 0 : i32
    return %c0_i32, %c0_i32_0 : i32, i32
  }
  func.func @transform_17(%arg0: i32) -> (i32, i32) {
    %c0_i32 = arith.constant 0 : i32
    %c0_i32_0 = arith.constant 0 : i32
    %c0_i32_1 = arith.constant 0 : i32
    return %c0_i32, %c0_i32_0 : i32, i32
  }
  func.func @transform_18(%arg0: i32) -> (i32, i32) {
    %c0_i32 = arith.constant 0 : i32
    %c0_i32_0 = arith.constant 0 : i32
    %c0_i32_1 = arith.constant 0 : i32
    return %c0_i32, %c0_i32_0 : i32, i32
  }
  func.func @transform_19(%arg0: i32) -> (i32, i32, i32) {
    %c0_i32 = arith.constant 0 : i32
    %c0_i32_0 = arith.constant 0 : i32
    %c0_i32_1 = arith.constant 0 : i32
    return %arg0, %c0_i32, %c0_i32_0 : i32, i32, i32
  }
}

</mosaic_0001>

<bundles_post_ra>
// kernel: tpu_custom_call.1
= control target key start
LH: loop header
LB: loop body
LE: loop exit
PB: predicated region body
PF: predicated region fallthrough
CT: control target
= control target key end

     0   :  { %s4303_s0 = inlined_call_operand.vmem [shape: f32[2,8,32], index: 0, kind: input, shape index: {}]   ;;  %s4304_s1 = inlined_call_operand.vmem [shape: f32[4,32,8], index: 1, kind: input, shape index: {}]   ;;  %s4305_s2 = inlined_call_operand.vmem [shape: f32[4,1,8], index: 2, kind: input, shape index: {}]   ;;  %s4306_s3 = inlined_call_operand.vmem [shape: f32[4,32,8], index: 3, kind: input, shape index: {}]   ;;  %s4307_s4 = inlined_call_operand.vmem [shape: f32[4,1,8], index: 4, kind: input, shape index: {}]   ;;  %s4308_s5 = inlined_call_operand.vmem [shape: f32[4,32,8], index: 5, kind: input, shape index: {}]   ;;  %s4309_s6 = inlined_call_operand.vmem [shape: f32[4,1,8], index: 6, kind: input, shape index: {}]   ;;  %s4310_s7 = inlined_call_operand.vmem [shape: f32[4,8,32], index: 7, kind: input, shape index: {}]   ;;  %s4311_s8 = inlined_call_operand.vmem [shape: f32[1,32], index: 8, kind: input, shape index: {}]   ;;  %s4312_s9 = inlined_call_operand.vmem [shape: f32[32,64], index: 9, kind: input, shape index: {}]   ;;  %s4313_s10 = inlined_call_operand.vmem [shape: f32[1,64], index: 10, kind: input, shape index: {}]   ;;  %s4314_s11 = inlined_call_operand.vmem [shape: f32[64,32], index: 11, kind: input, shape index: {}]   ;;  %s4315_s12 = inlined_call_operand.vmem [shape: f32[1,32], index: 12, kind: input, shape index: {}]   ;;  %s4316_s13 = inlined_call_operand.vmem [shape: f32[1,32], index: 13, kind: input, shape index: {}]   ;;  %s4317_s14 = inlined_call_operand.vmem [shape: f32[1,32], index: 14, kind: input, shape index: {}]   ;;  %s4318_s15 = inlined_call_operand.vmem [shape: f32[1,32], index: 15, kind: input, shape index: {}]   ;;  %s4319_s16 = inlined_call_operand.vmem [shape: f32[1,32], index: 16, kind: input, shape index: {}]   ;;  %s4320_s17 = inlined_call_operand.vmem [shape: f32[1,32], index: 17, kind: input, shape index: {}]   ;;  %s4321_s18 = inlined_call_operand.vmem [shape: f32[1,32], index: 18, kind: input, shape index: {}]   ;;  %s4322_s19 = inlined_call_operand.hbm [shape: f32[2,8,32], index: 19, kind: output, shape index: {}]  }
   0x1   :  { %4327 = sst [smem:[#allocation5_spill]] %s4303_s0 }
   0x2   :  { %4328 = sst [smem:[#allocation6_spill]] %s4304_s1 }
   0x3   :  { %4329 = sst [smem:[#allocation7_spill]] %s4305_s2 }
   0x4   :  { %4330 = sst [smem:[#allocation8_spill]] %s4306_s3 }
   0x5   :  { %4331 = sst [smem:[#allocation9_spill]] %s4315_s12 }
   0x6   :  { %s4332_s20 = sld [smem:[#allocation8_spill]] }
   0x7   :  { %s4333_s12 = sld [smem:[#allocation6_spill]] }
   0xc   :  { %v166_v0 = vld [vmem:[%s4332_s20 + $0x18] sm:$0xff]  ;;  %v165_v2 = vld [vmem:[%s4332_s20 + $0x10] sm:$0xff]  ;;  %v164_v4 = vld [vmem:[%s4332_s20 + $0x8] sm:$0xff] }
   0xd   :  { %v73_v1 = vld [vmem:[%s4333_s12 + $0x18] sm:$0xff]  ;;  %3386 = vmatprep.subr.mxu1 %v166_v0  ;;  %v72_v3 = vld [vmem:[%s4333_s12 + $0x10] sm:$0xff]  ;;  %v71_v5 = vld [vmem:[%s4333_s12 + $0x8] sm:$0xff] }
   0xe   :  { %3375 = vmatprep.subr.mxu0 %v73_v1  ;;  %3387 = vmatpush3.msra.mxu1 %v166_v0  ;;  %v163_v6 = vld [vmem:[%s4332_s20] sm:$0xff] }
   0xf   :  { %3376 = vmatpush3.msra.mxu0 %v73_v1  ;;  %3388 = vmatprep.subr.mxu1 %v165_v2  ;;  %v70_v7 = vld [vmem:[%s4333_s12] sm:$0xff] }
  0x10   :  { %3377 = vmatprep.subr.mxu0 %v72_v3  ;;  %3389 = vmatpush3.msra.mxu1 %v165_v2 }
  0x11   :  { %3378 = vmatpush3.msra.mxu0 %v72_v3 }
  0x12   :  { %24 = vsyncpa [#allocation3], 0  ;;  %3390 = vmatprep.subr.mxu1 %v164_v4  ;;  %3379 = vmatprep.subr.mxu0 %v71_v5  ;;  %s4334_s22 = sld [smem:[#allocation5_spill]]  ;;  %vm81_vm0 = vcmask 261120   ;;  %v252_v10 = vld [vmem:[%s4308_s5 + $0x18] sm:$0xff]  ;;  %v251_v11 = vld [vmem:[%s4308_s5 + $0x10] sm:$0xff]  ;;  %v65_v30 = vlaneseq }
  0x13   :  { %3391 = vmatpush3.msra.mxu1 %v164_v4  ;;  %3380 = vmatpush3.msra.mxu0 %v71_v5  ;;  %v250_v12 = vld [vmem:[%s4308_s5 + $0x8] sm:$0xff]  ;;  %v249_v13 = vld [vmem:[%s4308_s5] sm:$0xff]  ;;  %v3708_v14 = vmov 0.0   ;;  %vm3709_vm1 = vmmov 0   ;;  %s4335_s2 = sld [smem:[#allocation7_spill]]  ;;  %vm335_vm2 = vcmask 64512  }
  0x14   :  { %3392 = vmatprep.subr.mxu1 %v163_v6  ;;  %3381 = vmatprep.subr.mxu0 %v70_v7  ;;  %v3117_v15 = vld [vmem:[%s4307_s4] ss:$0 sm:$0xff]  ;;  %v66_v31 = vshrl.u32 %v65_v30, 7  ;;  %v68_v32 = vand.u32 127, %v65_v30  ;;  %v3140_v54 = vld [vmem:[%s4332_s20 + $0x38] sm:$0xff]  ;;  %v3139_v60 = vld [vmem:[%s4332_s20 + $0x30] sm:$0xff] }
  0x15   :  { %3393 = vmatpush3.msra.mxu1 %v163_v6  ;;  %3382 = vmatpush3.msra.mxu0 %v70_v7  ;;  %v3120_v25 = vld [vmem:[%s4309_s6] ss:$0 sm:$0xff]  ;;  %v3132_v55 = vld [vmem:[%s4333_s12 + $0x38] sm:$0xff]  ;;  %v3138_v62 = vld [vmem:[%s4332_s20 + $0x28] sm:$0xff]  ;;  %vm2924_vm4 = vcmask 523264  }
  0x16   :  { %3397 = vmatprep.subr.mxu0 %v252_v10  ;;  %3413 = vmatprep.subr.mxu1 %v3708_v14  ;;  %vm3896_vm3 = vcmp.le.s32.totalorder %v68_v32, %v66_v31  ;;  %v3131_v0 = vld [vmem:[%s4333_s12 + $0x30] sm:$0xff]  ;;  %v3137_v1 = vld [vmem:[%s4332_s20 + $0x20] sm:$0xff]  ;;  %v3130_v2 = vld [vmem:[%s4333_s12 + $0x28] sm:$0xff] }
  0x17   :  { %v3129_v3 = vld [vmem:[%s4333_s12 + $0x20] sm:$0xff] }
  0x18   :  { %v3840_v8 = vld [vmem:[%s4334_s22] sm:$0xff]  ;;  %v3845_v9 = vld [vmem:[%s4334_s22 + $0x8] sm:$0xff]  ;;  %s3710_s22 = smov [#allocation2]  }
  0x19   :  { %3394 = vmatprep.mubr.msk.f32.mxu1 %vm81_vm0, %v3840_v8  ;;  %3383 = vmatprep.mubr.msk.f32.mxu0 %vm81_vm0, %v3840_v8  ;;  %v3114_v16 = vld [vmem:[%s4335_s2] ss:$0 sm:$0xff] }
  0x1a   :  { %3395 = vmatmul.mubr.msk.f32.vlgmr.msra.gmra.mxu1 %vm81_vm0, %v3845_v9  ;;  %3384 = vmatmul.mubr.msk.f32.vlgmr.msra.gmra.mxu0 %vm81_vm0, %v3845_v9 }
  0x1b   :  { %3405 = vmatprep.mubr.msk.f32.mxu0 %vm81_vm0, %v3840_v8  ;;  %3398 = vmatpush3.msra.mxu0 %v252_v10 }
  0x1c   :  { %3399 = vmatprep.subr.mxu0 %v251_v11  ;;  %3415 = vmatprep.mubr.msk.f32.mxu1 %vm3709_vm1, %v3708_v14 }
  0x1d   :  { %3400 = vmatpush3.msra.mxu0 %v251_v11  ;;  %v3142_v11 = vld [vmem:[%s4307_s4 + $0x1] ss:$0 sm:$0xff] }
  0x1e   :  { %3401 = vmatprep.subr.mxu0 %v250_v12 }
  0x1f   :  { %3402 = vmatpush3.msra.mxu0 %v250_v12 }
  0x20   :  { %3403 = vmatprep.subr.mxu0 %v249_v13 }
  0x21   :  { %3404 = vmatpush3.msra.mxu0 %v249_v13 }
  0x22   :  { %3406 = vmatmul.mubr.msk.f32.vlgmr.msra.gmra.mxu0 %vm81_vm0, %v3845_v9  ;;  %3408 = vmatprep.subr.mxu0 %v3708_v14 }
  0x23   :  { %3410 = vmatprep.mubr.msk.f32.mxu0 %vm3709_vm1, %v3708_v14 }
  0xda   :  { %v3396_v17 = vpop.f32.mrf.mxu1  ;;  %v3385_v18 = vpop.f32.mrf.mxu0 }
  0xdb   :  { %v246_v19 = vadd.f32 %v3396_v17, %v3117_v15  ;;  %v160_v20 = vadd.f32 %v3385_v18, %v3114_v16 }
  0xdc   :  { %v240_v21 = vpop.f32.mrf.mxu1  ;;  %v154_v23 = vpop.f32.mrf.mxu0 }
  0xdd   :  { %v241_v22 = vadd.f32 %v3117_v15, %v240_v21  ;;  %3414 = vmatpush3.xpose.msk.msra.mxu1 %vm335_vm2, %v246_v19  ;;  %v155_v24 = vadd.f32 %v3114_v16, %v154_v23  ;;  %v3134_v16 = vld [vmem:[%s4335_s2 + $0x1] ss:$0 sm:$0xff]  ;;  %v3148_v21 = vld [vmem:[%s4308_s5 + $0x38] sm:$0xff]  ;;  %v3146_v23 = vld [vmem:[%s4308_s5 + $0x28] sm:$0xff] }
  0xde   :  { %3423 = vmatprep.subr.mxu1 %v3708_v14 }
  0xdf   :  { %3409 = vmatpush3.xpose.msk.msra.mxu0 %vm335_vm2, %v241_v22  ;;  %v3147_v22 = vld [vmem:[%s4308_s5 + $0x30] sm:$0xff] }
  0xe0   :  { %3416 = vmatmul.mubr.msk.f32.vlgmr.msra.gmra.mxu1 %vm335_vm2, %v160_v20  ;;  %3418 = vmatprep.subr.mxu0 %v3708_v14 }
  0xe1   :  { %3425 = vmatprep.mubr.msk.f32.mxu1 %vm3709_vm1, %v3708_v14 }
  0xe2   :  { %3411 = vmatmul.mubr.msk.f32.vlgmr.msra.gmra.mxu0 %vm335_vm2, %v155_v24  ;;  %v3407_v26 = vpop.f32.mrf.mxu0  ;;  %v3145_v24 = vld [vmem:[%s4308_s5 + $0x20] sm:$0xff] }
  0xe3   :  { %3420 = vmatprep.mubr.msk.f32.mxu0 %vm3709_vm1, %v3708_v14  ;;  %v332_v27 = vadd.f32 %v3407_v26, %v3120_v25 }
  0xe4   :  { %v326_v28 = vpop.f32.mrf.mxu0 }
  0xe5   :  { %v327_v29 = vadd.f32 %v3120_v25, %v326_v28  ;;  %3424 = vmatpush3.msra.mxu1 %v332_v27 }
  0xe6   :  { %3439 = vmatprep.subr.mxu1 %v3140_v54 }
  0xe7   :  { %3419 = vmatpush3.msra.mxu0 %v327_v29 }
  0xe8   :  { %3428 = vmatprep.subr.mxu0 %v3132_v55 }
 0x1a0   :  { %v484_v34 = vpop.f32.mrf.mxu1 }
 0x1a1   :  { %v489_v35 = vsel %vm3896_vm3, %v484_v34, -inf }
 0x1a2   :  { %v408_v36 = vpop.f32.mrf.mxu0  ;;  %v3417_v37 = vpop.f32.mrf.mxu1  ;;  %v493_v38 = vsel %vm335_vm2, %v489_v35, -inf }
 0x1a3   :  { %494 = vmax.xlane.f32.xlu0 %v493_v38  ;;  %v488_v39 = vsel %vm3896_vm3, %v408_v36, -inf }
 0x1a4   :  { %v3412_v40 = vpop.f32.mrf.mxu0  ;;  %v490_v41 = vsel %vm335_vm2, %v488_v39, -inf }
 0x1a7   :  { %491 = vmax.xlane.f32.xlu0 %v490_v41 }
 0x22c   :  { %v495_v42 = vpop.xlane.xlu0 %494 }
 0x22d   :  { %v497_v43 = vsub.f32 %v484_v34, %v495_v42 }
 0x22f   :  { %v500_v44 = vmul.f32 1.442695, %v497_v43 }
 0x230   :  { %v492_v45 = vpop.xlane.xlu0 %491 }
 0x231   :  { %3642 = vpow2.f32 %v500_v44  ;;  %v496_v46 = vsub.f32 %v408_v36, %v492_v45 }
 0x233   :  { %v498_v47 = vmul.f32 1.442695, %v496_v46 }
 0x235   :  { %3644 = vpow2.f32 %v498_v47  ;;  %v3150_v47 = vld [vmem:[%s4309_s6 + $0x1] ss:$0 sm:$0xff] }
 0x23e   :  { %v3643_v48 = vpop.eup %3642 }
 0x23f   :  { %v503_v49 = vsel %vm3896_vm3, %v3643_v48, 0.0 }
 0x240   :  { %v507_v50 = vsel %vm335_vm2, %v503_v49, 0.0 }
 0x241   :  { %508 = vadd.xlane.f32.xlu1 %v507_v50 }
 0x242   :  { %v3645_v51 = vpop.eup %3644 }
 0x243   :  { %v502_v52 = vsel %vm3896_vm3, %v3645_v51, 0.0  ;;  %v660_v51 = vld [vmem:[%s4310_s7] sm:$0xff] }
 0x244   :  { %v504_v53 = vsel %vm335_vm2, %v502_v52, 0.0 }
 0x245   :  { %505 = vadd.xlane.f32.xlu1 %v504_v53 }
 0x2ca   :  { %v509_v56 = vpop.xlane.xlu1 %508 }
 0x2cb   :  { %3646 = vrcp.f32 %v509_v56 }
 0x2ce   :  { %v506_v57 = vpop.xlane.xlu1 %505 }
 0x2cf   :  { %3648 = vrcp.f32 %v506_v57 }
 0x2d8   :  { %v3647_v58 = vpop.eup %3646 }
 0x2d9   :  { %v513_v59 = vmul.f32 %v3647_v58, %v503_v49  ;;  %v3175_v58 = vld [vmem:[%s4332_s20 + $0x58] sm:$0xff] }
 0x2db   :  { %3426 = vmatmul.mubr.msk.f32.vlgmr.msra.gmra.mxu1 %vm335_vm2, %v513_v59  ;;  %v3159_v59 = vld [vmem:[%s4310_s7 + $0x8] sm:$0xff] }
 0x2dc   :  { %v3649_v61 = vpop.eup %3648  ;;  %3440 = vmatpush3.msra.mxu1 %v3140_v54  ;;  %3447 = vmatprep.mubr.msk.f32.mxu1 %vm81_vm0, %v3840_v8 }
 0x2dd   :  { %3441 = vmatprep.subr.mxu1 %v3139_v60  ;;  %v512_v63 = vmul.f32 %v3649_v61, %v502_v52  ;;  %v3173_v61 = vld [vmem:[%s4332_s20 + $0x48] sm:$0xff] }
 0x2de   :  { %3442 = vmatpush3.msra.mxu1 %v3139_v60  ;;  %v3174_v60 = vld [vmem:[%s4332_s20 + $0x50] sm:$0xff] }
 0x2df   :  { %3443 = vmatprep.subr.mxu1 %v3138_v62  ;;  %3421 = vmatmul.mubr.msk.f32.vlgmr.msra.gmra.mxu0 %vm335_vm2, %v512_v63  ;;  %v3172_v63 = vld [vmem:[%s4332_s20 + $0x40] sm:$0xff] }
 0x2e0   :  { %3429 = vmatpush3.msra.mxu0 %v3132_v55  ;;  %3444 = vmatpush3.msra.mxu1 %v3138_v62  ;;  %v3167_v62 = vld [vmem:[%s4333_s12 + $0x58] sm:$0xff] }
 0x2e1   :  { %3430 = vmatprep.subr.mxu0 %v3131_v0  ;;  %3445 = vmatprep.subr.mxu1 %v3137_v1 }
 0x2e2   :  { %3431 = vmatpush3.msra.mxu0 %v3131_v0  ;;  %3446 = vmatpush3.msra.mxu1 %v3137_v1 }
 0x2e3   :  { %3432 = vmatprep.subr.mxu0 %v3130_v2  ;;  %3448 = vmatmul.mubr.msk.f32.vlgmr.msra.gmra.mxu1 %vm81_vm0, %v3845_v9 }
 0x2e4   :  { %3433 = vmatpush3.msra.mxu0 %v3130_v2  ;;  %3436 = vmatprep.mubr.msk.f32.mxu0 %vm81_vm0, %v3840_v8 }
 0x2e5   :  { %3434 = vmatprep.subr.mxu0 %v3129_v3  ;;  %3461 = vmatprep.subr.mxu1 %v3708_v14 }
 0x2e6   :  { %3435 = vmatpush3.msra.mxu0 %v3129_v3  ;;  %3463 = vmatprep.mubr.msk.f32.mxu1 %vm3709_vm1, %v3708_v14  ;;  %v3166_v3 = vld [vmem:[%s4333_s12 + $0x50] sm:$0xff] }
 0x2e7   :  { %3437 = vmatmul.mubr.msk.f32.vlgmr.msra.gmra.mxu0 %vm81_vm0, %v3845_v9  ;;  %3450 = vmatprep.subr.mxu0 %v3148_v21 }
 0x2e8   :  { %3458 = vmatprep.mubr.msk.f32.mxu0 %vm81_vm0, %v3840_v8  ;;  %3451 = vmatpush3.msra.mxu0 %v3148_v21 }
 0x2e9   :  { %3452 = vmatprep.subr.mxu0 %v3147_v22 }
 0x2ea   :  { %3453 = vmatpush3.msra.mxu0 %v3147_v22 }
 0x2eb   :  { %3454 = vmatprep.subr.mxu0 %v3146_v23 }
 0x2ec   :  { %3455 = vmatpush3.msra.mxu0 %v3146_v23 }
 0x2ed   :  { %3456 = vmatprep.subr.mxu0 %v3145_v24 }
 0x2ee   :  { %3457 = vmatpush3.msra.mxu0 %v3145_v24  ;;  %v3183_v24 = vld [vmem:[%s4308_s5 + $0x58] sm:$0xff] }
 0x2ef   :  { %3459 = vmatmul.mubr.msk.f32.vlgmr.msra.gmra.mxu0 %vm81_vm0, %v3845_v9  ;;  %3471 = vmatprep.subr.mxu0 %v3708_v14 }
 0x2f0   :  { %3473 = vmatprep.mubr.msk.f32.mxu0 %vm3709_vm1, %v3708_v14 }
 0x39b   :  { %v3951_v4 = vpop.f32.mrf.mxu1 }
 0x39d   :  { %v3427_v5 = vpop.f32.mrf.mxu1 }
 0x39e   :  { %v3165_v5 = vld [vmem:[%s4333_s12 + $0x48] sm:$0xff] }
 0x39f   :  { %v3953_v6 = vpop.f32.mrf.mxu0 }
 0x3a1   :  { %v3422_v7 = vpop.f32.mrf.mxu0 }
 0x3a3   :  { %v3449_v10 = vpop.f32.mrf.mxu1 }
 0x3a4   :  { %v834_v19 = vadd.f32 %v3449_v10, %v3142_v11 }
 0x3a5   :  { %v828_v12 = vpop.f32.mrf.mxu1 }
 0x3a6   :  { %v829_v13 = vadd.f32 %v3142_v11, %v828_v12  ;;  %v3177_v12 = vld [vmem:[%s4307_s4 + $0x2] ss:$0 sm:$0xff] }
 0x3a7   :  { %v3438_v15 = vpop.f32.mrf.mxu0 }
 0x3a8   :  { %3462 = vmatpush3.xpose.msk.msra.mxu1 %vm335_vm2, %v829_v13  ;;  %v746_v20 = vadd.f32 %v3438_v15, %v3134_v16 }
 0x3a9   :  { %v740_v17 = vpop.f32.mrf.mxu0  ;;  %3466 = vmatprep.subr.mxu1 %v3708_v14 }
 0x3aa   :  { %v741_v18 = vadd.f32 %v3134_v16, %v740_v17 }
 0x3ac   :  { %3464 = vmatmul.mubr.msk.f32.vlgmr.msra.gmra.mxu1 %vm335_vm2, %v741_v18 }
 0x3ad   :  { %3467 = vmatpush3.xpose.msk.msra.mxu1 %vm335_vm2, %v834_v19  ;;  %3468 = vmatprep.mubr.msk.f32.mxu1 %vm3709_vm1, %v3708_v14 }
 0x3ae   :  { %3476 = vmatprep.subr.mxu1 %v3708_v14 }
 0x3af   :  { %v3460_v46 = vpop.f32.mrf.mxu0 }
 0x3b0   :  { %3469 = vmatmul.mubr.msk.f32.vlgmr.msra.gmra.mxu1 %vm335_vm2, %v746_v20  ;;  %v922_v48 = vadd.f32 %v3460_v46, %v3150_v47  ;;  %v3169_v20 = vld [vmem:[%s4335_s2 + $0x2] ss:$0 sm:$0xff] }
 0x3b1   :  { %3478 = vmatprep.mubr.msk.f32.mxu1 %vm3709_vm1, %v3708_v14  ;;  %v916_v49 = vpop.f32.mrf.mxu0 }
 0x3b2   :  { %v917_v50 = vadd.f32 %v3150_v47, %v916_v49  ;;  %3477 = vmatpush3.msra.mxu1 %v922_v48 }
 0x3b3   :  { %3486 = vmatprep.subr.mxu1 %v660_v51 }
 0x3b4   :  { %3472 = vmatpush3.msra.mxu0 %v917_v50  ;;  %v3185_v50 = vld [vmem:[%s4309_s6 + $0x2] ss:$0 sm:$0xff] }
 0x3b5   :  { %3481 = vmatprep.subr.mxu0 %v3159_v59 }
 0x46c   :  { %v997_v25 = vpop.f32.mrf.mxu1 }
 0x46d   :  { %v1077_v26 = vsel %vm3896_vm3, %v997_v25, -inf }
 0x46e   :  { %v3465_v27 = vpop.f32.mrf.mxu1  ;;  %v1079_v28 = vsel %vm335_vm2, %v1077_v26, -inf  ;;  %v3181_v26 = vld [vmem:[%s4308_s5 + $0x48] sm:$0xff] }
 0x46f   :  { %1080 = vmax.xlane.f32.xlu0 %v1079_v28  ;;  %v3180_v27 = vld [vmem:[%s4308_s5 + $0x40] sm:$0xff] }
 0x470   :  { %v1073_v29 = vpop.f32.mrf.mxu1 }
 0x471   :  { %v1078_v30 = vsel %vm3896_vm3, %v1073_v29, -inf }
 0x472   :  { %v3470_v31 = vpop.f32.mrf.mxu1  ;;  %v1082_v32 = vsel %vm335_vm2, %v1078_v30, -inf }
 0x473   :  { %1083 = vmax.xlane.f32.xlu1 %v1082_v32 }
 0x4f8   :  { %v1081_v34 = vpop.xlane.xlu0 %1080 }
 0x4f9   :  { %v1085_v35 = vsub.f32 %v997_v25, %v1081_v34  ;;  %v3182_v25 = vld [vmem:[%s4308_s5 + $0x50] sm:$0xff] }
 0x4fb   :  { %v1087_v36 = vmul.f32 1.442695, %v1085_v35 }
 0x4fc   :  { %v1084_v37 = vpop.xlane.xlu1 %1083 }
 0x4fd   :  { %3650 = vpow2.f32 %v1087_v36  ;;  %v1086_v38 = vsub.f32 %v1073_v29, %v1084_v37 }
 0x4ff   :  { %v1089_v39 = vmul.f32 1.442695, %v1086_v38 }
 0x501   :  { %3652 = vpow2.f32 %v1089_v39 }
 0x50a   :  { %v3651_v40 = vpop.eup %3650 }
 0x50b   :  { %v1091_v41 = vsel %vm3896_vm3, %v3651_v40, 0.0 }
 0x50c   :  { %v1093_v42 = vsel %vm335_vm2, %v1091_v41, 0.0 }
 0x50d   :  { %1094 = vadd.xlane.f32.xlu0 %v1093_v42 }
 0x50e   :  { %v3653_v43 = vpop.eup %3652 }
 0x50f   :  { %v1092_v44 = vsel %vm3896_vm3, %v3653_v43, 0.0 }
 0x510   :  { %v1096_v45 = vsel %vm335_vm2, %v1092_v44, 0.0 }
 0x511   :  { %1097 = vadd.xlane.f32.xlu1 %v1096_v45 }
 0x596   :  { %v1095_v52 = vpop.xlane.xlu0 %1094 }
 0x597   :  { %3654 = vrcp.f32 %v1095_v52 }
 0x59a   :  { %v1098_v53 = vpop.xlane.xlu1 %1097 }
 0x59b   :  { %3656 = vrcp.f32 %v1098_v53 }
 0x5a4   :  { %v3655_v54 = vpop.eup %3654 }
 0x5a5   :  { %v1101_v55 = vmul.f32 %v3655_v54, %v1091_v41 }
 0x5a7   :  { %3474 = vmatmul.mubr.msk.f32.vlgmr.msra.gmra.mxu0 %vm335_vm2, %v1101_v55 }
 0x5a8   :  { %v3657_v56 = vpop.eup %3656  ;;  %3482 = vmatpush3.msra.mxu0 %v3159_v59 }
 0x5a9   :  { %v1102_v57 = vmul.f32 %v3657_v56, %v1092_v44  ;;  %3491 = vmatprep.subr.mxu0 %v3167_v62 }
 0x5ab   :  { %3479 = vmatmul.mubr.msk.f32.vlgmr.msra.gmra.mxu1 %vm335_vm2, %v1102_v57 }
 0x5ac   :  { %3488 = vmatprep.mubr.msk.f32.mxu1 %vm335_vm2, %v3953_v6  ;;  %3487 = vmatpush3.msra.mxu1 %v660_v51  ;;  %v3164_v6 = vld [vmem:[%s4333_s12 + $0x40] sm:$0xff] }
 0x5ad   :  { %3502 = vmatprep.subr.mxu1 %v3175_v58 }
 0x5af   :  { %3489 = vmatmul.mubr.msk.f32.vlgmr.msra.gmra.mxu1 %vm335_vm2, %v3951_v4 }
 0x5b0   :  { %3503 = vmatpush3.msra.mxu1 %v3175_v58  ;;  %3510 = vmatprep.mubr.msk.f32.mxu1 %vm81_vm0, %v3840_v8 }
 0x5b1   :  { %3504 = vmatprep.subr.mxu1 %v3174_v60 }
 0x5b2   :  { %3505 = vmatpush3.msra.mxu1 %v3174_v60  ;;  %v3194_v60 = vld [vmem:[%s4310_s7 + $0x10] sm:$0xff] }
 0x5b3   :  { %3506 = vmatprep.subr.mxu1 %v3173_v61 }
 0x5b4   :  { %3507 = vmatpush3.msra.mxu1 %v3173_v61  ;;  %v3208_v61 = vld [vmem:[%s4332_s20 + $0x78] sm:$0xff] }
 0x5b5   :  { %3508 = vmatprep.subr.mxu1 %v3172_v63 }
 0x5b6   :  { %3509 = vmatpush3.msra.mxu1 %v3172_v63  ;;  %v3199_v63 = vld [vmem:[%s4333_s12 + $0x70] sm:$0xff] }
 0x5b7   :  { %3511 = vmatmul.mubr.msk.f32.vlgmr.msra.gmra.mxu1 %vm81_vm0, %v3845_v9  ;;  %3524 = vmatprep.subr.mxu1 %v3708_v14 }
 0x5b8   :  { %3526 = vmatprep.mubr.msk.f32.mxu1 %vm3709_vm1, %v3708_v14 }
 0x667   :  { %v1172_v0 = vpop.f32.mrf.mxu0 }
 0x668   :  { %3483 = vmatprep.mubr.msk.f32.mxu0 %vm335_vm2, %v1172_v0  ;;  %v3198_v0 = vld [vmem:[%s4333_s12 + $0x68] sm:$0xff] }
 0x669   :  { %v3475_v1 = vpop.f32.mrf.mxu0 }
 0x66a   :  { %v3197_v1 = vld [vmem:[%s4333_s12 + $0x60] sm:$0xff] }
 0x66b   :  { %v1245_v2 = vpop.f32.mrf.mxu1 }
 0x66c   :  { %3484 = vmatmul.mubr.msk.f32.vlgmr.msra.gmra.mxu0 %vm335_vm2, %v1245_v2 }
 0x66d   :  { %3492 = vmatpush3.msra.mxu0 %v3167_v62  ;;  %v3480_v4 = vpop.f32.mrf.mxu1  ;;  %3499 = vmatprep.mubr.msk.f32.mxu0 %vm81_vm0, %v3840_v8  ;;  %v3200_v62 = vld [vmem:[%s4333_s12 + $0x78] sm:$0xff] }
 0x66e   :  { %3493 = vmatprep.subr.mxu0 %v3166_v3 }
 0x66f   :  { %3494 = vmatpush3.msra.mxu0 %v3166_v3  ;;  %v4054_v7 = vpop.f32.mrf.mxu1 }
 0x670   :  { %3495 = vmatprep.subr.mxu0 %v3165_v5 }
 0x671   :  { %3496 = vmatpush3.msra.mxu0 %v3165_v5  ;;  %v4056_v10 = vpop.f32.mrf.mxu1  ;;  %v3207_v5 = vld [vmem:[%s4332_s20 + $0x70] sm:$0xff] }
 0x672   :  { %3497 = vmatprep.subr.mxu0 %v3164_v6 }
 0x673   :  { %3498 = vmatpush3.msra.mxu0 %v3164_v6 }
 0x674   :  { %3500 = vmatmul.mubr.msk.f32.vlgmr.msra.gmra.mxu0 %vm81_vm0, %v3845_v9  ;;  %3513 = vmatprep.subr.mxu0 %v3183_v24 }
 0x675   :  { %3521 = vmatprep.mubr.msk.f32.mxu0 %vm81_vm0, %v3840_v8  ;;  %3514 = vmatpush3.msra.mxu0 %v3183_v24  ;;  %v3210_v24 = vld [vmem:[%s4307_s4 + $0x3] ss:$0 sm:$0xff] }
 0x676   :  { %3515 = vmatprep.subr.mxu0 %v3182_v25 }
 0x677   :  { %v3512_v11 = vpop.f32.mrf.mxu1  ;;  %3516 = vmatpush3.msra.mxu0 %v3182_v25 }
 0x678   :  { %v1586_v13 = vadd.f32 %v3512_v11, %v3177_v12  ;;  %3517 = vmatprep.subr.mxu0 %v3181_v26  ;;  %v3206_v11 = vld [vmem:[%s4332_s20 + $0x68] sm:$0xff] }
 0x679   :  { %v1580_v15 = vpop.f32.mrf.mxu1  ;;  %3518 = vmatpush3.msra.mxu0 %v3181_v26 }
 0x67a   :  { %v1581_v16 = vadd.f32 %v3177_v12, %v1580_v15  ;;  %3519 = vmatprep.subr.mxu0 %v3180_v27  ;;  %v3205_v12 = vld [vmem:[%s4332_s20 + $0x60] sm:$0xff] }
 0x67b   :  { %3520 = vmatpush3.msra.mxu0 %v3180_v27 }
 0x67c   :  { %3525 = vmatpush3.xpose.msk.msra.mxu1 %vm335_vm2, %v1581_v16  ;;  %3522 = vmatmul.mubr.msk.f32.vlgmr.msra.gmra.mxu0 %vm81_vm0, %v3845_v9 }
 0x67d   :  { %3529 = vmatprep.subr.mxu1 %v3708_v14  ;;  %3534 = vmatprep.subr.mxu0 %v3708_v14 }
 0x67e   :  { %3536 = vmatprep.mubr.msk.f32.mxu0 %vm3709_vm1, %v3708_v14 }
 0x72c   :  { %v4063_v17 = vpop.f32.mrf.mxu0 }
 0x72e   :  { %v4065_v18 = vpop.f32.mrf.mxu0 }
 0x72f   :  { %v1405_v16 = vadd.f32 %v4056_v10, %v4065_v18 }
 0x734   :  { %v3501_v19 = vpop.f32.mrf.mxu0 }
 0x735   :  { %v1498_v23 = vadd.f32 %v3501_v19, %v3169_v20 }
 0x736   :  { %v1492_v21 = vpop.f32.mrf.mxu0 }
 0x737   :  { %v1493_v22 = vadd.f32 %v3169_v20, %v1492_v21 }
 0x739   :  { %3527 = vmatmul.mubr.msk.f32.vlgmr.msra.gmra.mxu1 %vm335_vm2, %v1493_v22 }
 0x73a   :  { %3530 = vmatpush3.xpose.msk.msra.mxu1 %vm335_vm2, %v1586_v13  ;;  %3531 = vmatprep.mubr.msk.f32.mxu1 %vm3709_vm1, %v3708_v14  ;;  %v1410_v13 = vadd.f32 %v4054_v7, %v4063_v17  ;;  %v3202_v7 = vld [vmem:[%s4335_s2 + $0x3] ss:$0 sm:$0xff]  ;;  %s4338_s2 = sld [smem:[#allocation9_spill]] }
 0x73b   :  { %3539 = vmatprep.subr.mxu1 %v3708_v14 }
 0x73c   :  { %v3523_v49 = vpop.f32.mrf.mxu0 }
 0x73d   :  { %3532 = vmatmul.mubr.msk.f32.vlgmr.msra.gmra.mxu1 %vm335_vm2, %v1498_v23  ;;  %v1674_v51 = vadd.f32 %v3523_v49, %v3185_v50 }
 0x73e   :  { %3541 = vmatprep.mubr.msk.f32.mxu1 %vm3709_vm1, %v3708_v14  ;;  %v1668_v52 = vpop.f32.mrf.mxu0 }
 0x73f   :  { %v1669_v53 = vadd.f32 %v3185_v50, %v1668_v52  ;;  %3540 = vmatpush3.msra.mxu1 %v1674_v51 }
 0x740   :  { %3549 = vmatprep.subr.mxu1 %v3200_v62 }
 0x741   :  { %3535 = vmatpush3.msra.mxu0 %v1669_v53  ;;  %v3218_v53 = vld [vmem:[%s4309_s6 + $0x3] ss:$0 sm:$0xff] }
 0x742   :  { %3544 = vmatprep.subr.mxu0 %v3194_v60 }
 0x7f9   :  { %v1749_v28 = vpop.f32.mrf.mxu1 }
 0x7fa   :  { %v1829_v29 = vsel %vm3896_vm3, %v1749_v28, -inf }
 0x7fb   :  { %v3528_v30 = vpop.f32.mrf.mxu1  ;;  %v1831_v31 = vsel %vm335_vm2, %v1829_v29, -inf  ;;  %v3215_v29 = vld [vmem:[%s4308_s5 + $0x70] sm:$0xff] }
 0x7fc   :  { %1832 = vmax.xlane.f32.xlu0 %v1831_v31  ;;  %v3214_v30 = vld [vmem:[%s4308_s5 + $0x68] sm:$0xff]  ;;  %v3213_v31 = vld [vmem:[%s4308_s5 + $0x60] sm:$0xff] }
 0x7fd   :  { %v1825_v32 = vpop.f32.mrf.mxu1 }
 0x7fe   :  { %v1830_v34 = vsel %vm3896_vm3, %v1825_v32, -inf }
 0x7ff   :  { %v3533_v35 = vpop.f32.mrf.mxu1  ;;  %v1834_v36 = vsel %vm335_vm2, %v1830_v34, -inf }
 0x800   :  { %1835 = vmax.xlane.f32.xlu1 %v1834_v36 }
 0x885   :  { %v1833_v37 = vpop.xlane.xlu0 %1832 }
 0x886   :  { %v1837_v38 = vsub.f32 %v1749_v28, %v1833_v37  ;;  %v3216_v28 = vld [vmem:[%s4308_s5 + $0x78] sm:$0xff] }
 0x888   :  { %v1839_v39 = vmul.f32 1.442695, %v1837_v38 }
 0x889   :  { %v1836_v40 = vpop.xlane.xlu1 %1835 }
 0x88a   :  { %3658 = vpow2.f32 %v1839_v39  ;;  %v1838_v41 = vsub.f32 %v1825_v32, %v1836_v40 }
 0x88c   :  { %v1841_v42 = vmul.f32 1.442695, %v1838_v41 }
 0x88e   :  { %3660 = vpow2.f32 %v1841_v42 }
 0x897   :  { %v3659_v43 = vpop.eup %3658 }
 0x898   :  { %v1843_v44 = vsel %vm3896_vm3, %v3659_v43, 0.0 }
 0x899   :  { %v1845_v45 = vsel %vm335_vm2, %v1843_v44, 0.0 }
 0x89a   :  { %1846 = vadd.xlane.f32.xlu0 %v1845_v45 }
 0x89b   :  { %v3661_v46 = vpop.eup %3660 }
 0x89c   :  { %v1844_v47 = vsel %vm3896_vm3, %v3661_v46, 0.0 }
 0x89d   :  { %v1848_v48 = vsel %vm335_vm2, %v1844_v47, 0.0 }
 0x89e   :  { %1849 = vadd.xlane.f32.xlu1 %v1848_v48 }
 0x923   :  { %v1847_v54 = vpop.xlane.xlu0 %1846 }
 0x924   :  { %3662 = vrcp.f32 %v1847_v54 }
 0x927   :  { %v1850_v55 = vpop.xlane.xlu1 %1849 }
 0x928   :  { %3664 = vrcp.f32 %v1850_v55 }
 0x931   :  { %v3663_v56 = vpop.eup %3662 }
 0x932   :  { %v1853_v57 = vmul.f32 %v3663_v56, %v1843_v44 }
 0x934   :  { %3537 = vmatmul.mubr.msk.f32.vlgmr.msra.gmra.mxu0 %vm335_vm2, %v1853_v57 }
 0x935   :  { %v3665_v58 = vpop.eup %3664  ;;  %3545 = vmatpush3.msra.mxu0 %v3194_v60 }
 0x936   :  { %v1854_v59 = vmul.f32 %v3665_v58, %v1844_v47  ;;  %3560 = vmatprep.subr.mxu0 %v3208_v61 }
 0x938   :  { %3542 = vmatmul.mubr.msk.f32.vlgmr.msra.gmra.mxu1 %vm335_vm2, %v1854_v59 }
 0x939   :  { %3557 = vmatprep.mubr.msk.f32.mxu1 %vm81_vm0, %v3840_v8  ;;  %3550 = vmatpush3.msra.mxu1 %v3200_v62  ;;  %v3227_v62 = vld [vmem:[%s4310_s7 + $0x18] sm:$0xff] }
 0x93a   :  { %3551 = vmatprep.subr.mxu1 %v3199_v63 }
 0x93b   :  { %3552 = vmatpush3.msra.mxu1 %v3199_v63 }
 0x93c   :  { %3553 = vmatprep.subr.mxu1 %v3198_v0 }
 0x93d   :  { %3554 = vmatpush3.msra.mxu1 %v3198_v0 }
 0x93e   :  { %3555 = vmatprep.subr.mxu1 %v3197_v1 }
 0x93f   :  { %3556 = vmatpush3.msra.mxu1 %v3197_v1 }
 0x940   :  { %3558 = vmatmul.mubr.msk.f32.vlgmr.msra.gmra.mxu1 %vm81_vm0, %v3845_v9  ;;  %3571 = vmatprep.subr.mxu1 %v3216_v28 }
 0x941   :  { %3579 = vmatprep.mubr.msk.f32.mxu1 %vm81_vm0, %v3840_v8  ;;  %3572 = vmatpush3.msra.mxu1 %v3216_v28  ;;  %v2815_v28 = vld [vmem:[%s4312_s9] sm:$0xff] }
 0x942   :  { %3573 = vmatprep.subr.mxu1 %v3215_v29 }
 0x943   :  { %3574 = vmatpush3.msra.mxu1 %v3215_v29  ;;  %v2916_v29 = vld [vmem:[%s4314_s11 + $0x38] sm:$0xff] }
 0x944   :  { %3575 = vmatprep.subr.mxu1 %v3214_v30 }
 0x945   :  { %3576 = vmatpush3.msra.mxu1 %v3214_v30  ;;  %v2915_v30 = vld [vmem:[%s4314_s11 + $0x30] sm:$0xff] }
 0x946   :  { %3577 = vmatprep.subr.mxu1 %v3213_v31 }
 0x947   :  { %3578 = vmatpush3.msra.mxu1 %v3213_v31  ;;  %v2914_v31 = vld [vmem:[%s4314_s11 + $0x28] sm:$0xff] }
 0x948   :  { %3580 = vmatmul.mubr.msk.f32.vlgmr.msra.gmra.mxu1 %vm81_vm0, %v3845_v9  ;;  %3592 = vmatprep.subr.mxu1 %v3708_v14 }
 0x949   :  { %3594 = vmatprep.mubr.msk.f32.mxu1 %vm3709_vm1, %v3708_v14 }
 0x9f4   :  { %v1924_v2 = vpop.f32.mrf.mxu0 }
 0x9f5   :  { %3546 = vmatprep.mubr.msk.f32.mxu0 %vm335_vm2, %v1924_v2 }
 0x9f6   :  { %v3538_v3 = vpop.f32.mrf.mxu0 }
 0x9f8   :  { %v1997_v4 = vpop.f32.mrf.mxu1 }
 0x9f9   :  { %3547 = vmatmul.mubr.msk.f32.vlgmr.msra.gmra.mxu0 %vm335_vm2, %v1997_v4  ;;  %v3230_v4 = vld [vmem:[%s4311_s8] ss:$0 sm:$0xff] }
 0x9fa   :  { %3561 = vmatpush3.msra.mxu0 %v3208_v61  ;;  %v3543_v6 = vpop.f32.mrf.mxu1  ;;  %3568 = vmatprep.mubr.msk.f32.mxu0 %vm81_vm0, %v3840_v8 }
 0x9fb   :  { %3562 = vmatprep.subr.mxu0 %v3207_v5 }
 0x9fc   :  { %3563 = vmatpush3.msra.mxu0 %v3207_v5 }
 0x9fd   :  { %3564 = vmatprep.subr.mxu0 %v3206_v11 }
 0x9fe   :  { %3565 = vmatpush3.msra.mxu0 %v3206_v11 }
 0x9ff   :  { %3566 = vmatprep.subr.mxu0 %v3205_v12 }
 0xa00   :  { %3567 = vmatpush3.msra.mxu0 %v3205_v12  ;;  %v3559_v22 = vpop.f32.mrf.mxu1 }
 0xa01   :  { %3569 = vmatmul.mubr.msk.f32.vlgmr.msra.gmra.mxu0 %vm81_vm0, %v3845_v9  ;;  %3582 = vmatprep.subr.mxu0 %v3708_v14  ;;  %v2171_v27 = vadd.f32 %v3559_v22, %v3202_v7 }
 0xa02   :  { %3584 = vmatprep.mubr.msk.f32.mxu0 %vm3709_vm1, %v3708_v14  ;;  %v2165_v26 = vpop.f32.mrf.mxu1 }
 0xa03   :  { %v2166_v10 = vadd.f32 %v3202_v7, %v2165_v26 }
 0xa08   :  { %v3581_v52 = vpop.f32.mrf.mxu1 }
 0xa09   :  { %v2347_v54 = vadd.f32 %v3581_v52, %v3218_v53  ;;  %v2909_v52 = vld [vmem:[%s4314_s11] sm:$0xff] }
 0xa0a   :  { %v2341_v55 = vpop.f32.mrf.mxu1 }
 0xa0b   :  { %v2342_v56 = vadd.f32 %v3218_v53, %v2341_v55  ;;  %v3233_v53 = vld [vmem:[%s4313_s10] ss:$0 sm:$0xff] }
 0xa0d   :  { %3593 = vmatpush3.msra.mxu1 %v2342_v56 }
 0xa0e   :  { %3602 = vmatprep.subr.mxu1 %v3227_v62 }
 0xab9   :  { %v3548_v15 = vpop.f32.mrf.mxu0 }
 0xaba   :  { %v4158_v19 = vadd.f32 %v3548_v15, %v1410_v13 }
 0xabb   :  { %v2075_v20 = vpop.f32.mrf.mxu0 }
 0xabc   :  { %v4160_v21 = vadd.f32 %v2075_v20, %v1405_v16 }
 0xac1   :  { %v3570_v23 = vpop.f32.mrf.mxu0 }
 0xac2   :  { %v2259_v18 = vadd.f32 %v3570_v23, %v3210_v24 }
 0xac3   :  { %v2253_v25 = vpop.f32.mrf.mxu0 }
 0xac4   :  { %v2254_v17 = vadd.f32 %v3210_v24, %v2253_v25 }
 0xac6   :  { %3583 = vmatpush3.xpose.msk.msra.mxu0 %vm335_vm2, %v2254_v17 }
 0xac7   :  { %3587 = vmatprep.subr.mxu0 %v3708_v14 }
 0xac9   :  { %3585 = vmatmul.mubr.msk.f32.vlgmr.msra.gmra.mxu0 %vm335_vm2, %v2166_v10 }
 0xaca   :  { %3588 = vmatpush3.xpose.msk.msra.mxu0 %vm335_vm2, %v2259_v18  ;;  %3589 = vmatprep.mubr.msk.f32.mxu0 %vm3709_vm1, %v3708_v14  ;;  %v2817_v18 = vld [vmem:[%s4312_s9 + $0x10] sm:$0xff] }
 0xacb   :  { %3597 = vmatprep.subr.mxu0 %v3708_v14 }
 0xacd   :  { %3590 = vmatmul.mubr.msk.f32.vlgmr.msra.gmra.mxu0 %vm335_vm2, %v2171_v27  ;;  %v2816_v27 = vld [vmem:[%s4312_s9 + $0x8] sm:$0xff] }
 0xace   :  { %3599 = vmatprep.mubr.msk.f32.mxu0 %vm3709_vm1, %v3708_v14  ;;  %3598 = vmatpush3.msra.mxu0 %v2347_v54 }
 0xb89   :  { %v2422_v32 = vpop.f32.mrf.mxu0 }
 0xb8a   :  { %v2502_v34 = vsel %vm3896_vm3, %v2422_v32, -inf }
 0xb8b   :  { %v3586_v35 = vpop.f32.mrf.mxu0  ;;  %v2504_v36 = vsel %vm335_vm2, %v2502_v34, -inf }
 0xb8c   :  { %2505 = vmax.xlane.f32.xlu0 %v2504_v36 }
 0xb8d   :  { %v2498_v37 = vpop.f32.mrf.mxu0 }
 0xb8e   :  { %v2503_v38 = vsel %vm3896_vm3, %v2498_v37, -inf }
 0xb8f   :  { %v3591_v39 = vpop.f32.mrf.mxu0  ;;  %v2507_v40 = vsel %vm335_vm2, %v2503_v38, -inf }
 0xb90   :  { %2508 = vmax.xlane.f32.xlu1 %v2507_v40 }
 0xc15   :  { %v2506_v41 = vpop.xlane.xlu0 %2505 }
 0xc16   :  { %v2510_v42 = vsub.f32 %v2422_v32, %v2506_v41  ;;  %v2913_v32 = vld [vmem:[%s4314_s11 + $0x20] sm:$0xff] }
 0xc17   :  { %v3231_v41 = vld [vmem:[%s4316_s13] ss:$0 sm:$0xff] }
 0xc18   :  { %v2512_v43 = vmul.f32 1.442695, %v2510_v42 }
 0xc19   :  { %v2509_v14 = vpop.xlane.xlu1 %2508 }
 0xc1a   :  { %3666 = vpow2.f32 %v2512_v43  ;;  %v2511_v44 = vsub.f32 %v2498_v37, %v2509_v14 }
 0xc1c   :  { %v2514_v45 = vmul.f32 1.442695, %v2511_v44 }
 0xc1e   :  { %3668 = vpow2.f32 %v2514_v45  ;;  %v3232_v45 = vld [vmem:[%s4317_s14] ss:$0 sm:$0xff] }
 0xc27   :  { %v3667_v46 = vpop.eup %3666 }
 0xc28   :  { %v2516_v47 = vsel %vm3896_vm3, %v3667_v46, 0.0 }
 0xc29   :  { %v2518_v48 = vsel %vm335_vm2, %v2516_v47, 0.0 }
 0xc2a   :  { %2519 = vadd.xlane.f32.xlu0 %v2518_v48 }
 0xc2b   :  { %v3669_v49 = vpop.eup %3668 }
 0xc2c   :  { %v2517_v50 = vsel %vm3896_vm3, %v3669_v49, 0.0  ;;  %v2912_v49 = vld [vmem:[%s4314_s11 + $0x18] sm:$0xff] }
 0xc2d   :  { %v2521_v51 = vsel %vm335_vm2, %v2517_v50, 0.0 }
 0xc2e   :  { %2522 = vadd.xlane.f32.xlu1 %v2521_v51  ;;  %v2910_v51 = vld [vmem:[%s4314_s11 + $0x8] sm:$0xff] }
 0xcb3   :  { %v2520_v57 = vpop.xlane.xlu0 %2519 }
 0xcb4   :  { %3670 = vrcp.f32 %v2520_v57 }
 0xcb7   :  { %v2523_v58 = vpop.xlane.xlu1 %2522 }
 0xcb8   :  { %3672 = vrcp.f32 %v2523_v58 }
 0xcc1   :  { %v3671_v59 = vpop.eup %3670 }
 0xcc2   :  { %v2526_v33 = vmul.f32 %v3671_v59, %v2516_v47 }
 0xcc4   :  { %3595 = vmatmul.mubr.msk.f32.vlgmr.msra.gmra.mxu1 %vm335_vm2, %v2526_v33  ;;  %v3236_v33 = vld [vmem:[%s4338_s2] ss:$0 sm:$0xff] }
 0xcc5   :  { %v3673_v60 = vpop.eup %3672  ;;  %3603 = vmatpush3.msra.mxu1 %v3227_v62 }
 0xcc6   :  { %v2527_v61 = vmul.f32 %v3673_v60, %v2517_v50  ;;  %3618 = vmatprep.subr.mxu1 %v2916_v29  ;;  %v2911_v50 = vld [vmem:[%s4314_s11 + $0x10] sm:$0xff] }
 0xcc8   :  { %3600 = vmatmul.mubr.msk.f32.vlgmr.msra.gmra.mxu0 %vm335_vm2, %v2527_v61 }
 0xd84   :  { %v2597_v63 = vpop.f32.mrf.mxu1 }
 0xd85   :  { %3604 = vmatprep.mubr.msk.f32.mxu1 %vm335_vm2, %v2597_v63 }
 0xd86   :  { %v3596_v0 = vpop.f32.mrf.mxu1 }
 0xd88   :  { %v2670_v1 = vpop.f32.mrf.mxu0 }
 0xd89   :  { %3605 = vmatmul.mubr.msk.f32.vlgmr.msra.gmra.mxu1 %vm335_vm2, %v2670_v1 }
 0xd8a   :  { %v3601_v2 = vpop.f32.mrf.mxu0  ;;  %3619 = vmatpush3.msra.mxu1 %v2916_v29 }
 0xd8b   :  { %3620 = vmatprep.subr.mxu1 %v2915_v30 }
 0xd8c   :  { %3621 = vmatpush3.msra.mxu1 %v2915_v30 }
 0xd8d   :  { %3622 = vmatprep.subr.mxu1 %v2914_v31 }
 0xd8e   :  { %3623 = vmatpush3.msra.mxu1 %v2914_v31 }
 0xd8f   :  { %3624 = vmatprep.subr.mxu1 %v2913_v32 }
 0xd90   :  { %3625 = vmatpush3.msra.mxu1 %v2913_v32 }
 0xd91   :  { %3626 = vmatprep.subr.mxu1 %v2912_v49 }
 0xd92   :  { %3627 = vmatpush3.msra.mxu1 %v2912_v49 }
 0xd93   :  { %3628 = vmatprep.subr.mxu1 %v2911_v50 }
 0xd94   :  { %3629 = vmatpush3.msra.mxu1 %v2911_v50  ;;  %v3241_v50 = vld [vmem:[%s4320_s17] ss:$0 sm:$0xff] }
 0xd95   :  { %3630 = vmatprep.subr.mxu1 %v2910_v51 }
 0xd96   :  { %3631 = vmatpush3.msra.mxu1 %v2910_v51 }
 0xd97   :  { %3632 = vmatprep.subr.mxu1 %v2909_v52 }
 0xd98   :  { %3633 = vmatpush3.msra.mxu1 %v2909_v52 }
 0xe49   :  { %v3606_v3 = vpop.f32.mrf.mxu1 }
 0xe4a   :  { %v2758_v5 = vadd.f32 %v3606_v3, %v4158_v19 }
 0xe4b   :  { %v2748_v6 = vpop.f32.mrf.mxu1 }
 0xe4c   :  { %v2767_v11 = vadd.f32 %v3230_v4, %v2758_v5  ;;  %v2757_v12 = vadd.f32 %v2748_v6, %v4160_v21 }
 0xe4e   :  { %v2766_v13 = vadd.f32 %v3230_v4, %v2757_v12  ;;  %v2769_v15 = vadd.f32 %v2767_v11, %v3845_v9 }
 0xe50   :  { %v2775_v16 = vsel %vm81_vm0, %v2769_v15, 0.0  ;;  %v2768_v20 = vadd.f32 %v2766_v13, %v3840_v8  ;;  %v2818_v8 = vld [vmem:[%s4312_s9 + $0x18] sm:$0xff]  ;;  %s3103_s9 = sshll.u32 %s3710_s22, 4  ;;  %s3104_s9 = int_to_ptr.vmem [resolvable:$true] %s3103_s9 }
 0xe51   :  { %2776 = vadd.xlane.f32.xlu1 %v2775_v16  ;;  %3607 = vmatprep.subr.mxu0 %v2818_v8  ;;  %s3686_s23 = scalar_lea.vmem %s3104_s9, 256  ;;  %p3691_p1 = scmp.lt.s32.totalorder %s3104_s9, %s3104_s9 }
 0xe52   :  { %v2772_v22 = vsel %vm81_vm0, %v2768_v20, 0.0  ;;  %3608 = vmatpush3.msra.mxu0 %v2818_v8  ;;  %v3240_v8 = vld [vmem:[%s4319_s16] ss:$0 sm:$0xff]  ;;  %p3687_p0 = scmp.ne.s32.totalorder %s3104_s9, %s3686_s23  ;;  %p3692_p2 = scmp.lt.s32.totalorder %s3686_s23, %s3686_s23 }
 0xe53   :  { %2773 = vadd.xlane.f32.xlu0 %v2772_v22  ;;  %3609 = vmatprep.subr.mxu0 %v2817_v18 }
 0xe54   :  { %3610 = vmatpush3.msra.mxu0 %v2817_v18  ;;  %p3693_p3 = por %p3692_p2, %p3691_p1 }
 0xe55   :  { %3611 = vmatprep.subr.mxu0 %v2816_v27 }
 0xe56   :  { %3612 = vmatpush3.msra.mxu0 %v2816_v27  ;;  %p3694_p4 = pnand %p3693_p3, %p3687_p0 }
 0xe57   :  { %3613 = vmatprep.subr.mxu0 %v2815_v28 }
 0xe58   :  { %3614 = vmatpush3.msra.mxu0 %v2815_v28 }
 0xeda   :  { %v2777_v23 = vpop.xlane.xlu1 %2776 }
 0xedb   :  { %v2780_v24 = vmul.f32 0.03125, %v2777_v23 }
 0xedc   :  { %v2774_v25 = vpop.xlane.xlu0 %2773 }
 0xedd   :  { %v2782_v7 = vsub.f32 %v2769_v15, %v2780_v24  ;;  %v2779_v19 = vmul.f32 0.03125, %v2774_v25 }
 0xedf   :  { %v2781_v17 = vsub.f32 %v2768_v20, %v2779_v19  ;;  %v2784_v26 = vmul.f32 %v2782_v7, %v2782_v7 }
 0xee1   :  { %v2788_v21 = vsel %vm81_vm0, %v2784_v26, 0.0  ;;  %v2783_v10 = vmul.f32 %v2781_v17, %v2781_v17 }
 0xee2   :  { %2789 = vadd.xlane.f32.xlu1 %v2788_v21  ;;  %v3239_v21 = vld [vmem:[%s4318_s15] ss:$0 sm:$0xff] }
 0xee3   :  { %v2785_v9 = vsel %vm81_vm0, %v2783_v10, 0.0 }
 0xee4   :  { %2786 = vadd.xlane.f32.xlu0 %v2785_v9 }
 0xf6b   :  { %v2790_v34 = vpop.xlane.xlu1 %2789 }
 0xf6c   :  { %v2792_v35 = vmul.f32 0.03125, %v2790_v34 }
 0xf6d   :  { %v2787_v36 = vpop.xlane.xlu0 %2786 }
 0xf6e   :  { %v2794_v37 = vadd.f32 1e-05, %v2792_v35  ;;  %v2791_v38 = vmul.f32 0.03125, %v2787_v36 }
 0xf70   :  { %3674 = vrsqrt.f32 %v2794_v37  ;;  %v2793_v39 = vadd.f32 1e-05, %v2791_v38 }
 0xf72   :  { %3676 = vrsqrt.f32 %v2793_v39 }
 0xf7d   :  { %v3675_v40 = vpop.eup %3674 }
 0xf7e   :  { %v2798_v42 = vmul.f32 %v3675_v40, %v2782_v7 }
 0xf7f   :  { %v3677_v43 = vpop.eup %3676 }
 0xf80   :  { %v2797_v14 = vmul.f32 %v3677_v43, %v2781_v17  ;;  %v2806_v44 = vmul.f32 %v3231_v41, %v2798_v42 }
 0xf82   :  { %v2805_v46 = vmul.f32 %v3231_v41, %v2797_v14  ;;  %v2814_v48 = vadd.f32 %v3232_v45, %v2806_v44 }
 0xf84   :  { %v2813_v47 = vadd.f32 %v3232_v45, %v2805_v46 }
 0xf86   :  { %3615 = vmatprep.mubr.msk.f32.mxu0 %vm81_vm0, %v2813_v47 }
 0xf87   :  { %3616 = vmatmul.mubr.msk.f32.vlgmr.msra.gmra.mxu0 %vm81_vm0, %v2814_v48 }
0x1047   :  { %v3617_v54 = vpop.f32.mrf.mxu0 }
0x1048   :  { %v2904_v55 = vadd.f32 %v3617_v54, %v3233_v53 }
0x1049   :  { %v2898_v56 = vpop.f32.mrf.mxu0 }
0x104a   :  { %v2899_v57 = vadd.f32 %v3233_v53, %v2898_v56  ;;  %v2908_v59 = vmax.f32 %v2904_v55, 0.0  ;;  %v3242_v53 = vld [vmem:[%s4321_s18] ss:$0 sm:$0xff] }
0x104c   :  { %v2907_v58 = vmax.f32 %v2899_v57, 0.0 }
0x104e   :  { %3634 = vmatprep.mubr.msk.f32.mxu1 %vm2924_vm4, %v2907_v58 }
0x104f   :  { %3635 = vmatmul.mubr.msk.f32.vlgmr.msra.gmra.mxu1 %vm2924_vm4, %v2908_v59 }
0x110f   :  { %v3636_v60 = vpop.f32.mrf.mxu1 }
0x1110   :  { %v3003_v61 = vadd.f32 %v3636_v60, %v3236_v33 }
0x1111   :  { %v2997_v62 = vpop.f32.mrf.mxu1 }
0x1112   :  { %v2998_v63 = vadd.f32 %v3236_v33, %v2997_v62  ;;  %v3007_v0 = vadd.f32 %v3003_v61, %v2814_v48 }
0x1114   :  { %v3013_v1 = vsel %vm81_vm0, %v3007_v0, 0.0  ;;  %v3006_v2 = vadd.f32 %v2998_v63, %v2813_v47 }
0x1115   :  { %3014 = vadd.xlane.f32.xlu1 %v3013_v1 }
0x1116   :  { %v3010_v3 = vsel %vm81_vm0, %v3006_v2, 0.0 }
0x1117   :  { %3011 = vadd.xlane.f32.xlu0 %v3010_v3 }
0x119e   :  { %v3015_v4 = vpop.xlane.xlu1 %3014 }
0x119f   :  { %v3017_v5 = vmul.f32 0.03125, %v3015_v4 }
0x11a0   :  { %v3012_v6 = vpop.xlane.xlu0 %3011 }
0x11a1   :  { %v3019_v11 = vsub.f32 %v3007_v0, %v3017_v5  ;;  %v3016_v12 = vmul.f32 0.03125, %v3012_v6 }
0x11a3   :  { %v3018_v13 = vsub.f32 %v3006_v2, %v3016_v12  ;;  %v3021_v15 = vmul.f32 %v3019_v11, %v3019_v11 }
0x11a5   :  { %v3025_v16 = vsel %vm81_vm0, %v3021_v15, 0.0  ;;  %v3020_v20 = vmul.f32 %v3018_v13, %v3018_v13 }
0x11a6   :  { %3026 = vadd.xlane.f32.xlu1 %v3025_v16 }
0x11a7   :  { %v3022_v22 = vsel %vm81_vm0, %v3020_v20, 0.0 }
0x11a8   :  { %3023 = vadd.xlane.f32.xlu0 %v3022_v22 }
0x122f   :  { %v3027_v23 = vpop.xlane.xlu1 %3026 }
0x1230   :  { %v3029_v24 = vmul.f32 0.03125, %v3027_v23 }
0x1231   :  { %v3024_v25 = vpop.xlane.xlu0 %3023 }
0x1232   :  { %v3031_v7 = vadd.f32 1e-05, %v3029_v24  ;;  %v3028_v19 = vmul.f32 0.03125, %v3024_v25 }
0x1234   :  { %3678 = vrsqrt.f32 %v3031_v7  ;;  %v3030_v17 = vadd.f32 1e-05, %v3028_v19 }
0x1236   :  { %3680 = vrsqrt.f32 %v3030_v17 }
0x1241   :  { %v3679_v26 = vpop.eup %3678 }
0x1242   :  { %v3035_v10 = vmul.f32 %v3679_v26, %v3019_v11 }
0x1243   :  { %v3681_v9 = vpop.eup %3680 }
0x1244   :  { %v3043_v18 = vmul.f32 %v3239_v21, %v3035_v10  ;;  %v3034_v27 = vmul.f32 %v3681_v9, %v3018_v13 }
0x1246   :  { %v3051_v28 = vadd.f32 %v3240_v8, %v3043_v18  ;;  %v3042_v29 = vmul.f32 %v3239_v21, %v3034_v27 }
0x1248   :  { %v3057_v30 = vsel %vm81_vm0, %v3051_v28, 0.0  ;;  %v3050_v31 = vadd.f32 %v3240_v8, %v3042_v29 }
0x1249   :  { %3058 = vadd.xlane.f32.xlu1 %v3057_v30 }
0x124a   :  { %v3054_v32 = vsel %vm81_vm0, %v3050_v31, 0.0 }
0x124b   :  { %3055 = vadd.xlane.f32.xlu0 %v3054_v32 }
0x12d2   :  { %v3059_v34 = vpop.xlane.xlu1 %3058 }
0x12d3   :  { %v3061_v35 = vmul.f32 0.03125, %v3059_v34 }
0x12d4   :  { %v3056_v36 = vpop.xlane.xlu0 %3055 }
0x12d5   :  { %v3063_v37 = vsub.f32 %v3051_v28, %v3061_v35  ;;  %v3060_v38 = vmul.f32 0.03125, %v3056_v36 }
0x12d7   :  { %v3062_v39 = vsub.f32 %v3050_v31, %v3060_v38  ;;  %v3065_v40 = vmul.f32 %v3063_v37, %v3063_v37 }
0x12d9   :  { %v3069_v41 = vsel %vm81_vm0, %v3065_v40, 0.0  ;;  %v3064_v42 = vmul.f32 %v3062_v39, %v3062_v39 }
0x12da   :  { %3070 = vadd.xlane.f32.xlu1 %v3069_v41 }
0x12db   :  { %v3066_v43 = vsel %vm81_vm0, %v3064_v42, 0.0 }
0x12dc   :  { %3067 = vadd.xlane.f32.xlu0 %v3066_v43 }
0x1363   :  { %v3071_v14 = vpop.xlane.xlu1 %3070 }
0x1364   :  { %v3073_v44 = vmul.f32 0.03125, %v3071_v14 }
0x1365   :  { %v3068_v45 = vpop.xlane.xlu0 %3067 }
0x1366   :  { %v3075_v46 = vadd.f32 1e-05, %v3073_v44  ;;  %v3072_v47 = vmul.f32 0.03125, %v3068_v45 }
0x1368   :  { %3682 = vrsqrt.f32 %v3075_v46  ;;  %v3074_v48 = vadd.f32 1e-05, %v3072_v47 }
0x136a   :  { %3684 = vrsqrt.f32 %v3074_v48 }
0x1375   :  { %v3683_v49 = vpop.eup %3682 }
0x1376   :  { %v3079_v51 = vmul.f32 %v3683_v49, %v3063_v37 }
0x1377   :  { %v3685_v52 = vpop.eup %3684 }
0x1378   :  { %v3078_v54 = vmul.f32 %v3685_v52, %v3062_v39  ;;  %v3087_v55 = vmul.f32 %v3241_v50, %v3079_v51 }
0x137a   :  { %v3086_v56 = vmul.f32 %v3241_v50, %v3078_v54  ;;  %v3095_v57 = vadd.f32 %v3242_v53, %v3087_v55 }
0x137c   :  { %v3094_v58 = vadd.f32 %v3242_v53, %v3086_v56  ;;  %3097 = vst.msk [vmem:[#allocation2 + $0x8] sm:$0xff] %vm81_vm0, %v3095_v57 }
0x137e   :  { %3096 = vst.msk [vmem:[#allocation2] sm:$0xff] %vm81_vm0, %v3094_v58 }
0x137f   :  { %3697 = shalt.err (!%p3694_p4)
}
0x1380   :  { %s3711_s17 = smov 128   ;;  %s3712_s18 = smov 8  }
0x1381   :  { %3109 = dma.vmem_to_hbm [thread:$0]  %s3104_s9, 256, %s4322_s19, [#allocation3], %s3711_s17, %s3711_s17, %s3712_s18  }
0x1382   :  { %3706 = dma.done.wait [#allocation3], 256  }
0x1383   :  { %3707 = vsyncadd [#allocation3], 4294967040 }
0x1384   :  { %3113 = vsyncpa [#allocation3], 1 }

</bundles_post_ra>
